<compile_context>
chip_gen: v7x
topology: tpu7x:2x2x1
jax: 0.10.0
libtpu: 0.0.40
codegen_flags: <defaults>
</compile_context>

<pallas_src>
import functools

import jax
import jax.numpy as jnp
from jax import lax
from jax.experimental import pallas as pl
from jax.experimental.pallas import tpu as pltpu


def _inter_set_kernel(
    x_ref, xk_ref, idx_ref, pr_ref,
    w_p1_ref, bn_shift_ref, w_p2_ref, b_p2_ref,
    w_lin_ref, b_lin_ref, w_x_ref, b_x_ref,
    o_ref,
    m_ref, acc_ref,
    *, tile_n, out_planes,
):
    f32 = jnp.float32
    bf16 = jnp.bfloat16
    k = pl.program_id(1)

    @pl.when(k == 0)
    def _init():
        # shrink >= 0 (post-ReLU), so 0.0 is a valid initial running max.
        m_ref[...] = jnp.zeros_like(m_ref)
        acc_ref[...] = jnp.zeros_like(acc_ref)

    xk = xk_ref[...]                                   # (tile_nk, C) f32
    pr = pr_ref[...]                                   # (tile_nk, 3) f32

    # linear_p: Linear(3,3,no bias) + BN(train stats, folded into the weight) + ReLU
    # + Linear(3,C)
    pn = jnp.maximum(
        jnp.dot(pr, w_p1_ref[...], preferred_element_type=f32) + bn_shift_ref[...],
        0.0)                                           # (tile_nk, 3)
    p_embed = (jnp.dot(pn, w_p2_ref[...], preferred_element_type=f32)
               + b_p2_ref[...])                        # (tile_nk, C)

    # self.linear(cat([p_embed, x_knn])): single fused matmul, repeat-folded weights
    feat = jnp.concatenate([p_embed, xk], axis=1)      # (tile_nk, 2C)
    shrink = jnp.maximum(
        jnp.dot(feat, w_lin_ref[...], preferred_element_type=f32) + b_lin_ref[...],
        0.0)                                           # (tile_nk, C)

    # self.linear_x (repeat-folded)
    x_v = jnp.maximum(
        jnp.dot(xk, w_x_ref[...], preferred_element_type=f32) + b_x_ref[...],
        0.0)                                           # (tile_nk, C)

    # Online (running-max) scatter-softmax statistics.
    m_prev = m_ref[...]                                # (1, 1)
    m_new = jnp.maximum(m_prev, jnp.max(shrink, keepdims=True))
    e = jnp.exp(shrink - m_new)                        # (tile_nk, C) f32

    # Transposed, lane-dense one-hot membership block; bf16 operands for the MXU.
    idx = idx_ref[...]                                 # (1, tile_nk) int32
    row = (lax.broadcasted_iota(jnp.int32, (tile_n, idx.shape[1]), 0)
           + pl.program_id(0) * tile_n)
    member = (row == idx).astype(bf16)                 # (tile_n, tile_nk)

    # Fused numer/denom segment-sum: one matmul, payload = [x_v * e, e].
    payload = jnp.concatenate([x_v * e, e], axis=1).astype(bf16)   # (tile_nk, 2C)
    contrib = jnp.dot(member, payload, preferred_element_type=f32)  # (tile_n, 2C)

    acc_ref[...] = acc_ref[...] * jnp.exp(m_prev - m_new) + contrib
    m_ref[...] = m_new

    @pl.when(k == pl.num_programs(1) - 1)
    def _finalize():
        acc = acc_ref[...]
        numer = acc[:, :out_planes]
        denom = jnp.maximum(acc[:, out_planes:], 1e-30)
        residual = numer * pl.reciprocal(denom, approx=True)
        o_ref[...] = x_ref[...] + residual


def _auto_tile(total, cap, align):
    if total <= cap:
        return total
    start = cap - (cap % align)
    for t in range(start, 0, -align):
        if total % t == 0:
            return t
    return total


def point_mixer_inter_set(x, x_knn, knn_idx, p_r, params, share_planes,
                          *, tile_n=None, tile_nk=None, bn_eps=1e-5):
    N, K, C = x_knn.shape
    Cs = C // share_planes
    NK = N * K
    f32 = jnp.float32

    x = x.astype(f32)
    xk = x_knn.reshape(NK, C).astype(f32)
    pr = p_r.reshape(NK, 3).astype(f32)
    idx = knn_idx.reshape(1, NK).astype(jnp.int32)     # lane-dense index layout

    # BatchNorm1d train-mode batch statistics over the FULL (NK, 3) batch, folded into
    # the first linear of linear_p so that the kernel can tile the NK axis and stay
    # bit-consistent across tiles.  (Tiny (NK,3) pass; negligible vs the main body.)
    w_p1_t = params["w_p1"].T.astype(f32)                           # (3, 3)
    pm = pr @ w_p1_t
    mean = jnp.mean(pm, axis=0, keepdims=True)
    var = jnp.mean((pm - mean) ** 2, axis=0, keepdims=True)         # biased (train BN)
    scale = params["bn_gamma"].reshape(1, 3).astype(f32) * lax.rsqrt(var + bn_eps)
    w_p1_eff = w_p1_t * scale                                       # (3, 3)
    bn_shift = params["bn_beta"].reshape(1, 3).astype(f32) - mean * scale

    # Repeat-fold share_planes into the shrink/value weights (Cs -> C output width),
    # and pre-concatenate the two halves of self.linear into one (2C, C) weight.
    w_lin_cat = jnp.tile(params["w_lin"].T.astype(f32), (1, share_planes))      # (2C, C)
    b_lin = jnp.tile(params["b_lin"].reshape(1, Cs).astype(f32), (1, share_planes))
    w_x = jnp.tile(params["w_x"].T.astype(f32), (1, share_planes))              # (C, C)
    b_x = jnp.tile(params["b_x"].reshape(1, Cs).astype(f32), (1, share_planes))
    w_p2_t = params["w_p2"].T.astype(f32)                                       # (3, C)
    b_p2 = params["b_p2"].reshape(1, C).astype(f32)

    if tile_n is None:
        tile_n = _auto_tile(N, 256, 8)
    if tile_nk is None:
        tile_nk = _auto_tile(NK, 2048, 128)
    assert N % tile_n == 0 and (tile_n == N or tile_n % 8 == 0)
    assert NK % tile_nk == 0 and (tile_nk == NK or tile_nk % 128 == 0)
    grid = (N // tile_n, NK // tile_nk)

    def _full(a):
        return pl.BlockSpec(a.shape, lambda i, k: (0,) * a.ndim)

    weight_ins = (w_p1_eff, bn_shift, w_p2_t, b_p2, w_lin_cat, b_lin, w_x, b_x)
    in_specs = [
        pl.BlockSpec((tile_n, C), lambda i, k: (i, 0)),    # x (resident per N-tile)
        pl.BlockSpec((tile_nk, C), lambda i, k: (k, 0)),   # x_knn tile
        pl.BlockSpec((1, tile_nk), lambda i, k: (0, k)),   # knn_idx tile
        pl.BlockSpec((tile_nk, 3), lambda i, k: (k, 0)),   # p_r tile
    ] + [_full(w) for w in weight_ins]

    kernel = functools.partial(_inter_set_kernel, tile_n=tile_n, out_planes=C)

    return pl.pallas_call(
        kernel,
        out_shape=jax.ShapeDtypeStruct((N, C), f32),
        grid_spec=pltpu.PrefetchScalarGridSpec(
            num_scalar_prefetch=0,
            grid=grid,
            in_specs=in_specs,
            out_specs=pl.BlockSpec((tile_n, C), lambda i, k: (i, 0)),
            scratch_shapes=[
                pltpu.VMEM((1, 1), f32),               # running softmax max
                pltpu.VMEM((tile_n, 2 * C), f32),      # fused [numer | denom] accumulator
            ]),
        compiler_params=pltpu.CompilerParams(
            dimension_semantics=("parallel", "arbitrary")),
    )(x, xk, idx, pr, *weight_ins)


def init_params(key, in_planes, share_planes):
    C = in_planes
    Cs = C // share_planes
    ks = jax.random.split(key, 7)
    s = 0.1
    return dict(
        w_p1=jax.random.normal(ks[0], (3, 3), jnp.float32) * s,       # Linear(3,3,bias=False)
        bn_gamma=jnp.ones((3,), jnp.float32),                         # BatchNorm1d default
        bn_beta=jnp.zeros((3,), jnp.float32),
        w_p2=jax.random.normal(ks[1], (C, 3), jnp.float32) * s,       # Linear(3, C)
        b_p2=jax.random.normal(ks[2], (C,), jnp.float32) * s,
        w_lin=jax.random.normal(ks[3], (Cs, 2 * C), jnp.float32) * s,  # Linear(2C, Cs)
        b_lin=jax.random.normal(ks[4], (Cs,), jnp.float32) * s,
        w_x=jax.random.normal(ks[5], (Cs, C), jnp.float32) * s,       # Linear(C, Cs)
        b_x=jax.random.normal(ks[6], (Cs,), jnp.float32) * s,
    )


def reference(x, x_knn, knn_idx, p_r, params, share_planes, bn_eps=1e-5):
    """Pure-JAX reference mirroring the PyTorch module (per-group scatter softmax)."""
    N, K, C = x_knn.shape
    NK = N * K
    xk = x_knn.reshape(NK, C)
    pr = p_r.reshape(NK, 3)
    idx = knn_idx.reshape(NK).astype(jnp.int32)
    pm = pr @ params["w_p1"].T
    mean = pm.mean(0, keepdims=True)
    var = ((pm - mean) ** 2).mean(0, keepdims=True)
    pn = (pm - mean) / jnp.sqrt(var + bn_eps) * params["bn_gamma"] + params["bn_beta"]
    pn = jnp.maximum(pn, 0.0)
    pe = pn @ params["w_p2"].T + params["b_p2"]
    feat = jnp.concatenate([pe, xk], axis=1)
    shrink = jnp.maximum(feat @ params["w_lin"].T + params["b_lin"], 0.0)   # (NK, Cs)
    xv = jnp.maximum(xk @ params["w_x"].T + params["b_x"], 0.0)             # (NK, Cs)
    seg_max = jax.ops.segment_max(shrink, idx, num_segments=N)
    e = jnp.exp(shrink - seg_max[idx])
    seg_sum = jax.ops.segment_sum(e, idx, num_segments=N)
    prob = e / seg_sum[idx]
    residual = jax.ops.segment_sum(xv * prob, idx, num_segments=N)
    residual = jnp.tile(residual, (1, share_planes))
    return x + residual


if __name__ == "__main__":
    in_planes = 32        # C
    share_planes = 4      # Cs = 8
    nsample = 16          # K
    N = 64                # number of points  -> NK = 1024

    key = jax.random.PRNGKey(0)
    k_param, k_x, k_xk, k_idx, k_pr = jax.random.split(key, 5)
    params = init_params(k_param, in_planes, share_planes)

    x = jax.random.normal(k_x, (N, in_planes), jnp.float32)
    x_knn = jax.random.normal(k_xk, (N, nsample, in_planes), jnp.float32)
    knn_idx = jax.random.randint(k_idx, (N, nsample), 0, N, jnp.int32)
    p_r = jax.random.normal(k_pr, (N, nsample, 3), jnp.float32)

    # tile_n=32, tile_nk=256 -> grid (2, 4): exercises both the parallel N-tile axis
    # and the accumulating NK-tile axis.
    out = point_mixer_inter_set(x, x_knn, knn_idx, p_r, params, share_planes,
                                tile_n=32, tile_nk=256)
    out = jax.block_until_ready(out)

    ref = reference(x, x_knn, knn_idx, p_r, params, share_planes)
    assert out.shape == (N, in_planes)
    max_err = float(jnp.max(jnp.abs(out - ref)))
    # bf16 membership-matmul operands + approx reciprocal -> allow ~1e-2 tolerance
    assert bool(jnp.allclose(out, ref, atol=1e-2, rtol=1e-2)), \
        f"mismatch vs reference (max abs err {max_err})"

    print("KERNEL_OK")
</pallas_src>

<mosaic_0001>
module attributes {stable_mosaic.version = 11 : i64} {
  func.func @_inter_set_kernel(%arg0: i32, %arg1: i32, %arg2: memref<32x32xf32, #tpu.memory_space<vmem>>, %arg3: memref<256x32xf32, #tpu.memory_space<vmem>>, %arg4: memref<1x256xi32, #tpu.memory_space<vmem>>, %arg5: memref<256x3xf32, #tpu.memory_space<vmem>>, %arg6: memref<3x3xf32, #tpu.memory_space<vmem>>, %arg7: memref<1x3xf32, #tpu.memory_space<vmem>>, %arg8: memref<3x32xf32, #tpu.memory_space<vmem>>, %arg9: memref<1x32xf32, #tpu.memory_space<vmem>>, %arg10: memref<64x32xf32, #tpu.memory_space<vmem>>, %arg11: memref<1x32xf32, #tpu.memory_space<vmem>>, %arg12: memref<32x32xf32, #tpu.memory_space<vmem>>, %arg13: memref<1x32xf32, #tpu.memory_space<vmem>>, %arg14: memref<32x32xf32, #tpu.memory_space<vmem>>, %arg15: memref<1x1xf32, #tpu.memory_space<vmem>>, %arg16: memref<32x64xf32, #tpu.memory_space<vmem>>) attributes {dimension_semantics = [#tpu.dimension_semantics<parallel>, #tpu.dimension_semantics<arbitrary>], iteration_bounds = array<i64: 2, 4>, scalar_prefetch = 0 : i64, scratch_operands = 2 : i64, tpu.core_type = #tpu.core_type<tc>, window_params = [{transform_indices = @transform_0, window_bounds = array<i64: 32, 32>}, {transform_indices = @transform_1, window_bounds = array<i64: 256, 32>}, {transform_indices = @transform_2, window_bounds = array<i64: 1, 256>}, {transform_indices = @transform_3, window_bounds = array<i64: 256, 3>}, {pipeline_mode = #tpu.pipeline_mode<synchronous>, transform_indices = @transform_4, window_bounds = array<i64: 3, 3>}, {pipeline_mode = #tpu.pipeline_mode<synchronous>, transform_indices = @transform_5, window_bounds = array<i64: 1, 3>}, {pipeline_mode = #tpu.pipeline_mode<synchronous>, transform_indices = @transform_6, window_bounds = array<i64: 3, 32>}, {pipeline_mode = #tpu.pipeline_mode<synchronous>, transform_indices = @transform_7, window_bounds = array<i64: 1, 32>}, {pipeline_mode = #tpu.pipeline_mode<synchronous>, transform_indices = @transform_8, window_bounds = array<i64: 64, 32>}, {pipeline_mode = #tpu.pipeline_mode<synchronous>, transform_indices = @transform_9, window_bounds = array<i64: 1, 32>}, {pipeline_mode = #tpu.pipeline_mode<synchronous>, transform_indices = @transform_10, window_bounds = array<i64: 32, 32>}, {pipeline_mode = #tpu.pipeline_mode<synchronous>, transform_indices = @transform_11, window_bounds = array<i64: 1, 32>}, {transform_indices = @transform_12, window_bounds = array<i64: 32, 32>}]} {
    %c0_i32 = arith.constant 0 : i32
    %0 = arith.cmpi eq, %arg1, %c0_i32 : i32
    %1 = arith.extui %0 : i1 to i32
    %c0_i32_0 = arith.constant 0 : i32
    %2 = arith.cmpi ne, %1, %c0_i32_0 : i32
    scf.if %2 {
      %cst_39 = arith.constant 0.000000e+00 : f32
      %67 = vector.broadcast %cst_39 : f32 to vector<1x1xf32>
      %c0_40 = arith.constant 0 : index
      %c0_41 = arith.constant 0 : index
      %68 = vector.load %arg15[%c0_40, %c0_41] : memref<1x1xf32, #tpu.memory_space<vmem>>, vector<1x1xf32>
      tpu.vector_store %arg15[%c0_40, %c0_41], %67 {strides = array<i32>} : memref<1x1xf32, #tpu.memory_space<vmem>>, vector<1x1xf32>,
      %cst_42 = arith.constant 0.000000e+00 : f32
      %69 = vector.broadcast %cst_42 : f32 to vector<32x64xf32>
      %c0_43 = arith.constant 0 : index
      %c0_44 = arith.constant 0 : index
      %70 = vector.load %arg16[%c0_43, %c0_44] : memref<32x64xf32, #tpu.memory_space<vmem>>, vector<32x64xf32>
      tpu.vector_store %arg16[%c0_43, %c0_44], %69 {strides = array<i32>} : memref<32x64xf32, #tpu.memory_space<vmem>>, vector<32x64xf32>,
    } else {
    }
    %c0 = arith.constant 0 : index
    %c0_1 = arith.constant 0 : index
    %3 = vector.load %arg3[%c0, %c0_1] : memref<256x32xf32, #tpu.memory_space<vmem>>, vector<256x32xf32>
    %c0_2 = arith.constant 0 : index
    %c0_3 = arith.constant 0 : index
    %4 = vector.load %arg5[%c0_2, %c0_3] : memref<256x3xf32, #tpu.memory_space<vmem>>, vector<256x3xf32>
    %c0_4 = arith.constant 0 : index
    %c0_5 = arith.constant 0 : index
    %5 = vector.load %arg6[%c0_4, %c0_5] : memref<3x3xf32, #tpu.memory_space<vmem>>, vector<3x3xf32>
    %cst = arith.constant dense<0.000000e+00> : vector<256x3xf32>
    %6 = tpu.matmul %4, %5, %cst {dimension_numbers = #tpu.dot_dimension_numbers<[1], [0], [0], [1], [0, 0, 1, 1], [], []>} : vector<256x3xf32>, vector<3x3xf32>, vector<256x3xf32> -> vector<256x3xf32>
    %c0_6 = arith.constant 0 : index
    %c0_7 = arith.constant 0 : index
    %7 = vector.load %arg7[%c0_6, %c0_7] : memref<1x3xf32, #tpu.memory_space<vmem>>, vector<1x3xf32>
    %8 = vector.broadcast %7 : vector<1x3xf32> to vector<256x3xf32>
    %9 = arith.addf %6, %8 : vector<256x3xf32>
    %cst_8 = arith.constant 0.000000e+00 : f32
    %10 = vector.broadcast %cst_8 : f32 to vector<256x3xf32>
    %11 = arith.maximumf %9, %10 : vector<256x3xf32>
    %c0_9 = arith.constant 0 : index
    %c0_10 = arith.constant 0 : index
    %12 = vector.load %arg8[%c0_9, %c0_10] : memref<3x32xf32, #tpu.memory_space<vmem>>, vector<3x32xf32>
    %cst_11 = arith.constant dense<0.000000e+00> : vector<256x32xf32>
    %13 = tpu.matmul %11, %12, %cst_11 {dimension_numbers = #tpu.dot_dimension_numbers<[1], [0], [0], [1], [0, 0, 1, 1], [], []>} : vector<256x3xf32>, vector<3x32xf32>, vector<256x32xf32> -> vector<256x32xf32>
    %c0_12 = arith.constant 0 : index
    %c0_13 = arith.constant 0 : index
    %14 = vector.load %arg9[%c0_12, %c0_13] : memref<1x32xf32, #tpu.memory_space<vmem>>, vector<1x32xf32>
    %15 = vector.broadcast %14 : vector<1x32xf32> to vector<256x32xf32>
    %16 = arith.addf %13, %15 : vector<256x32xf32>
    %17 = tpu.concatenate %16, %3 in 1 : vector<256x32xf32>, vector<256x32xf32> -> vector<256x64xf32>
    %c0_14 = arith.constant 0 : index
    %c0_15 = arith.constant 0 : index
    %18 = vector.load %arg10[%c0_14, %c0_15] : memref<64x32xf32, #tpu.memory_space<vmem>>, vector<64x32xf32>
    %cst_16 = arith.constant dense<0.000000e+00> : vector<256x32xf32>
    %19 = tpu.matmul %17, %18, %cst_16 {dimension_numbers = #tpu.dot_dimension_numbers<[1], [0], [0], [1], [0, 0, 1, 1], [], []>} : vector<256x64xf32>, vector<64x32xf32>, vector<256x32xf32> -> vector<256x32xf32>
    %c0_17 = arith.constant 0 : index
    %c0_18 = arith.constant 0 : index
    %20 = vector.load %arg11[%c0_17, %c0_18] : memref<1x32xf32, #tpu.memory_space<vmem>>, vector<1x32xf32>
    %21 = vector.broadcast %20 : vector<1x32xf32> to vector<256x32xf32>
    %22 = arith.addf %19, %21 : vector<256x32xf32>
    %cst_19 = arith.constant 0.000000e+00 : f32
    %23 = vector.broadcast %cst_19 : f32 to vector<256x32xf32>
    %24 = arith.maximumf %22, %23 : vector<256x32xf32>
    %c0_20 = arith.constant 0 : index
    %c0_21 = arith.constant 0 : index
    %25 = vector.load %arg12[%c0_20, %c0_21] : memref<32x32xf32, #tpu.memory_space<vmem>>, vector<32x32xf32>
    %cst_22 = arith.constant dense<0.000000e+00> : vector<256x32xf32>
    %26 = tpu.matmul %3, %25, %cst_22 {dimension_numbers = #tpu.dot_dimension_numbers<[1], [0], [0], [1], [0, 0, 1, 1], [], []>} : vector<256x32xf32>, vector<32x32xf32>, vector<256x32xf32> -> vector<256x32xf32>
    %c0_23 = arith.constant 0 : index
    %c0_24 = arith.constant 0 : index
    %27 = vector.load %arg13[%c0_23, %c0_24] : memref<1x32xf32, #tpu.memory_space<vmem>>, vector<1x32xf32>
    %28 = vector.broadcast %27 : vector<1x32xf32> to vector<256x32xf32>
    %29 = arith.addf %26, %28 : vector<256x32xf32>
    %cst_25 = arith.constant 0.000000e+00 : f32
    %30 = vector.broadcast %cst_25 : f32 to vector<256x32xf32>
    %31 = arith.maximumf %29, %30 : vector<256x32xf32>
    %c0_26 = arith.constant 0 : index
    %c0_27 = arith.constant 0 : index
    %32 = vector.load %arg15[%c0_26, %c0_27] : memref<1x1xf32, #tpu.memory_space<vmem>>, vector<1x1xf32>
    %33 = vector.shape_cast %24 : vector<256x32xf32> to vector<1x256x32xf32>
    %cst_28 = arith.constant dense<0xFF800000> : vector<1xf32>
    %34 = vector.multi_reduction <maximumf>, %33, %cst_28 [1, 2] : vector<1x256x32xf32> to vector<1xf32>
    %35 = vector.shape_cast %34 : vector<1xf32> to vector<1x1x1xf32>
    %36 = vector.extract %35[0, 0, 0] : f32 from vector<1x1x1xf32>
    %37 = vector.broadcast %36 : f32 to vector<1x1xf32>
    %38 = arith.maximumf %32, %37 : vector<1x1xf32>
    %39 = vector.broadcast %38 : vector<1x1xf32> to vector<256x32xf32>
    %40 = arith.subf %24, %39 : vector<256x32xf32>
    %41 = math.exp %40 : vector<256x32xf32>
    %c0_29 = arith.constant 0 : index
    %c0_30 = arith.constant 0 : index
    %42 = vector.load %arg4[%c0_29, %c0_30] : memref<1x256xi32, #tpu.memory_space<vmem>>, vector<1x256xi32>
    %43 = tpu.iota {dimensions = array<i32: 0>} : vector<32x256xi32>
    %c32_i32 = arith.constant 32 : i32
    %44 = arith.muli %arg0, %c32_i32 : i32
    %45 = vector.broadcast %44 : i32 to vector<32x256xi32>
    %46 = arith.addi %43, %45 : vector<32x256xi32>
    %47 = vector.broadcast %42 : vector<1x256xi32> to vector<32x256xi32>
    %48 = arith.cmpi eq, %46, %47 : vector<32x256xi32>
    %49 = arith.extui %48 : vector<32x256xi1> to vector<32x256xi32>
    %50 = arith.sitofp %49 : vector<32x256xi32> to vector<32x256xf32>
    %51 = arith.truncf %50 : vector<32x256xf32> to vector<32x256xbf16>
    %52 = arith.mulf %31, %41 : vector<256x32xf32>
    %53 = tpu.concatenate %52, %41 in 1 : vector<256x32xf32>, vector<256x32xf32> -> vector<256x64xf32>
    %54 = arith.truncf %53 : vector<256x64xf32> to vector<256x64xbf16>
    %cst_31 = arith.constant dense<0.000000e+00> : vector<32x64xf32>
    %55 = tpu.matmul %51, %54, %cst_31 {dimension_numbers = #tpu.dot_dimension_numbers<[1], [0], [0], [1], [0, 0, 1, 1], [], []>} : vector<32x256xbf16>, vector<256x64xbf16>, vector<32x64xf32> -> vector<32x64xf32>
    %c0_32 = arith.constant 0 : index
    %c0_33 = arith.constant 0 : index
    %56 = vector.load %arg16[%c0_32, %c0_33] : memref<32x64xf32, #tpu.memory_space<vmem>>, vector<32x64xf32>
    %57 = arith.subf %32, %38 : vector<1x1xf32>
    %58 = math.exp %57 : vector<1x1xf32>
    %59 = vector.broadcast %58 : vector<1x1xf32> to vector<32x64xf32>
    %60 = arith.mulf %56, %59 : vector<32x64xf32>
    %61 = arith.addf %60, %55 : vector<32x64xf32>
    %c0_34 = arith.constant 0 : index
    %c0_35 = arith.constant 0 : index
    %62 = vector.load %arg16[%c0_34, %c0_35] : memref<32x64xf32, #tpu.memory_space<vmem>>, vector<32x64xf32>
    tpu.vector_store %arg16[%c0_34, %c0_35], %61 {strides = array<i32>} : memref<32x64xf32, #tpu.memory_space<vmem>>, vector<32x64xf32>,
    %c0_36 = arith.constant 0 : index
    %c0_37 = arith.constant 0 : index
    %63 = vector.load %arg15[%c0_36, %c0_37] : memref<1x1xf32, #tpu.memory_space<vmem>>, vector<1x1xf32>
    tpu.vector_store %arg15[%c0_36, %c0_37], %38 {strides = array<i32>} : memref<1x1xf32, #tpu.memory_space<vmem>>, vector<1x1xf32>,
    %c3_i32 = arith.constant 3 : i32
    %64 = arith.cmpi eq, %arg1, %c3_i32 : i32
    %65 = arith.extui %64 : i1 to i32
    %c0_i32_38 = arith.constant 0 : i32
    %66 = arith.cmpi ne, %65, %c0_i32_38 : i32
    scf.if %66 {
      %c0_39 = arith.constant 0 : index
      %c0_40 = arith.constant 0 : index
      %67 = vector.load %arg16[%c0_39, %c0_40] : memref<32x64xf32, #tpu.memory_space<vmem>>, vector<32x64xf32>
      %68 = vector.extract_strided_slice %67 {offsets = [0, 0], sizes = [32, 32], strides = [1, 1]} : vector<32x64xf32> to vector<32x32xf32>
      %69 = vector.extract_strided_slice %67 {offsets = [0, 32], sizes = [32, 32], strides = [1, 1]} : vector<32x64xf32> to vector<32x32xf32>
      %cst_41 = arith.constant 1.000000e-30 : f32
      %70 = vector.broadcast %cst_41 : f32 to vector<32x32xf32>
      %71 = arith.maximumf %69, %70 : vector<32x32xf32>
      %72 = tpu.reciprocal %71 {approx = true} : vector<32x32xf32> -> vector<32x32xf32>
      %73 = arith.mulf %68, %72 : vector<32x32xf32>
      %c0_42 = arith.constant 0 : index
      %c0_43 = arith.constant 0 : index
      %74 = vector.load %arg2[%c0_42, %c0_43] : memref<32x32xf32, #tpu.memory_space<vmem>>, vector<32x32xf32>
      %75 = arith.addf %74, %73 : vector<32x32xf32>
      %c0_44 = arith.constant 0 : index
      %c0_45 = arith.constant 0 : index
      %76 = vector.load %arg14[%c0_44, %c0_45] : memref<32x32xf32, #tpu.memory_space<vmem>>, vector<32x32xf32>
      tpu.vector_store %arg14[%c0_44, %c0_45], %75 {strides = array<i32>} : memref<32x32xf32, #tpu.memory_space<vmem>>, vector<32x32xf32>,
    } else {
    }
    return
  }
  func.func @transform_0(%arg0: i32, %arg1: i32) -> (i32, i32) {
    %c0_i32 = arith.constant 0 : i32
    %c0_i32_0 = arith.constant 0 : i32
    return %arg0, %c0_i32 : i32, i32
  }
  func.func @transform_1(%arg0: i32, %arg1: i32) -> (i32, i32) {
    %c0_i32 = arith.constant 0 : i32
    %c0_i32_0 = arith.constant 0 : i32
    return %arg1, %c0_i32 : i32, i32
  }
  func.func @transform_2(%arg0: i32, %arg1: i32) -> (i32, i32) {
    %c0_i32 = arith.constant 0 : i32
    %c0_i32_0 = arith.constant 0 : i32
    return %c0_i32, %arg1 : i32, i32
  }
  func.func @transform_3(%arg0: i32, %arg1: i32) -> (i32, i32) {
    %c0_i32 = arith.constant 0 : i32
    %c0_i32_0 = arith.constant 0 : i32
    return %arg1, %c0_i32 : i32, i32
  }
  func.func @transform_4(%arg0: i32, %arg1: i32) -> (i32, i32) {
    %c0_i32 = arith.constant 0 : i32
    %c0_i32_0 = arith.constant 0 : i32
    %c0_i32_1 = arith.constant 0 : i32
    return %c0_i32, %c0_i32_0 : i32, i32
  }
  func.func @transform_5(%arg0: i32, %arg1: i32) -> (i32, i32) {
    %c0_i32 = arith.constant 0 : i32
    %c0_i32_0 = arith.constant 0 : i32
    %c0_i32_1 = arith.constant 0 : i32
    return %c0_i32, %c0_i32_0 : i32, i32
  }
  func.func @transform_6(%arg0: i32, %arg1: i32) -> (i32, i32) {
    %c0_i32 = arith.constant 0 : i32
    %c0_i32_0 = arith.constant 0 : i32
    %c0_i32_1 = arith.constant 0 : i32
    return %c0_i32, %c0_i32_0 : i32, i32
  }
  func.func @transform_7(%arg0: i32, %arg1: i32) -> (i32, i32) {
    %c0_i32 = arith.constant 0 : i32
    %c0_i32_0 = arith.constant 0 : i32
    %c0_i32_1 = arith.constant 0 : i32
    return %c0_i32, %c0_i32_0 : i32, i32
  }
  func.func @transform_8(%arg0: i32, %arg1: i32) -> (i32, i32) {
    %c0_i32 = arith.constant 0 : i32
    %c0_i32_0 = arith.constant 0 : i32
    %c0_i32_1 = arith.constant 0 : i32
    return %c0_i32, %c0_i32_0 : i32, i32
  }
  func.func @transform_9(%arg0: i32, %arg1: i32) -> (i32, i32) {
    %c0_i32 = arith.constant 0 : i32
    %c0_i32_0 = arith.constant 0 : i32
    %c0_i32_1 = arith.constant 0 : i32
    return %c0_i32, %c0_i32_0 : i32, i32
  }
  func.func @transform_10(%arg0: i32, %arg1: i32) -> (i32, i32) {
    %c0_i32 = arith.constant 0 : i32
    %c0_i32_0 = arith.constant 0 : i32
    %c0_i32_1 = arith.constant 0 : i32
    return %c0_i32, %c0_i32_0 : i32, i32
  }
  func.func @transform_11(%arg0: i32, %arg1: i32) -> (i32, i32) {
    %c0_i32 = arith.constant 0 : i32
    %c0_i32_0 = arith.constant 0 : i32
    %c0_i32_1 = arith.constant 0 : i32
    return %c0_i32, %c0_i32_0 : i32, i32
  }
  func.func @transform_12(%arg0: i32, %arg1: i32) -> (i32, i32) {
    %c0_i32 = arith.constant 0 : i32
    %c0_i32_0 = arith.constant 0 : i32
    return %arg0, %c0_i32 : i32, i32
  }
}

</mosaic_0001>

<bundles_post_ra>
// kernel: tpu_custom_call.1
= control target key start
LH: loop header
LB: loop body
LE: loop exit
PB: predicated region body
PF: predicated region fallthrough
CT: control target
= control target key end

     0   :  { %s3690_s21 = smov 0   ;;  %s3692_s22 = smov 0   ;;  %s5064_s0 = inlined_call_operand.vmem [shape: f32[64,32], index: 0, kind: input, shape index: {}]   ;;  %s5065_s1 = inlined_call_operand.vmem [shape: f32[1024,32], index: 1, kind: input, shape index: {}]   ;;  %s5066_s2 = inlined_call_operand.vmem [shape: s32[1,1024], index: 2, kind: input, shape index: {}]   ;;  %s5067_s3 = inlined_call_operand.vmem [shape: f32[1024,3], index: 3, kind: input, shape index: {}]   ;;  %s5068_s4 = inlined_call_operand.vmem [shape: f32[3,3], index: 4, kind: input, shape index: {}]   ;;  %s5069_s5 = inlined_call_operand.vmem [shape: f32[1,3], index: 5, kind: input, shape index: {}]   ;;  %s5070_s6 = inlined_call_operand.vmem [shape: f32[3,32], index: 6, kind: input, shape index: {}]   ;;  %s5071_s7 = inlined_call_operand.vmem [shape: f32[1,32], index: 7, kind: input, shape index: {}]   ;;  %s5072_s8 = inlined_call_operand.vmem [shape: f32[64,32], index: 8, kind: input, shape index: {}]   ;;  %s5073_s9 = inlined_call_operand.vmem [shape: f32[1,32], index: 9, kind: input, shape index: {}]   ;;  %s5074_s10 = inlined_call_operand.vmem [shape: f32[32,32], index: 10, kind: input, shape index: {}]   ;;  %s5075_s11 = inlined_call_operand.vmem [shape: f32[1,32], index: 11, kind: input, shape index: {}]   ;;  %s5076_s12 = inlined_call_operand.vmem [shape: f32[64,32], index: 12, kind: output, shape index: {}]  }
   0x1   :  { %5121 = sst [smem:[#allocation24_spill]] %s5064_s0  ;;  %s3694_s23 = smov 0  }
   0x2   :  { %s3696_s24 = smov 0   ;;  %s3698_s25 = smov 0  }
   0x3 LB: > { %5122 = sst [smem:[#allocation4_spill]] %s3610_s23  ;;  %s31_s26 = sadd.s32 1, %s3610_s23  ;;  %s3618_s25 = sphi %s3698_s25, %s22_s25   ;;  %s3614_s24 = sphi %s3696_s24, %s5212_s24   ;;  %s3610_s23 = sphi %s3694_s23, %s5211_s23   ;;  %s3606_s22 = sphi %s3692_s22, %s5210_s22   ;;  %s3602_s21 = sphi %s3690_s21, %s5209_s21  }
   0x4   : > { %5123 = sst [smem:[#allocation5_spill]] %s3614_s24  ;;  %s34_s27 = sadd.s32 1, %s3614_s24 }
   0x5   : > { %p32_p0 = scmp.ge.s32.totalorder %s31_s26, 4  ;;  %p2796_p1 = scmp.ge.s32.totalorder %s3618_s25, 1 }
   0x6   : > { %p407_p2 = scmp.lt.s32.totalorder %s3618_s25, 9 }
   0x7   : > { %s5214_s26 = smov (%p32_p0, %s31_s26), 0  ;;  %s5216_s27 = smov (!%p32_p0, %s34_s27), %s3614_s24 }
   0x8   : > { %5124 = sst [smem:[#allocation6_spill]] %s5214_s26  ;;  %p408_p3 = pnand %p2796_p1, %p407_p2 }
   0x9   : > { %p36_p4 = scmp.ge.s32.totalorder %s5216_s27, 2 }
   0xa   : > { %411 = sbr.rel (%p408_p3) target bundleno = 1673 (0x689), region = 68 }
   0xb   : > { %s5218_s27 = smov (%p36_p4, %s5216_s27), 0 }
   0xc   : > { %5125 = sst [smem:[#allocation7_spill]] %s5218_s27 }
  0x11   : > { %s2797_s28 = sshll.u32 %s3606_s22, 2  ;;  %s2799_s29 = sshll.u32 %s3602_s21, 5 }
  0x12   : > { %p464_p5 = scmp.lt.s32.totalorder %s2797_s28, 7  ;;  %p470_p6 = scmp.lt.s32.totalorder %s2799_s29, 127 }
  0x13   : > { %s2801_s30 = sshll.u32 %s3602_s21, 1  ;;  %s5126_s0 = sld [smem:[#allocation24_spill]] }
  0x14   : > { %s5220_s28 = smov (!%p464_p5, %s2797_s28), 7  ;;  %s5222_s29 = smov (!%p470_p6, %s2799_s29), 127 }
  0x15   : > { %s2798_s13 = sshll.u32 %s5220_s28, 3  ;;  %p476_p7 = scmp.lt.s32.totalorder %s2801_s30, 7 }
  0x16   : > { %s2800_s17 = sshll.u32 %s5222_s29, 3  ;;  %s3747_s14 = scalar_lea.vmem %s5076_s12, %s2798_s13 }
  0x17   : > { %s3735_s20 = scalar_lea.vmem %s5065_s1, %s2800_s17  ;;  %s3740_s24 = scalar_lea.vmem %s5067_s3, %s2800_s17 }
  0x18   : > { %s5224_s30 = smov (!%p476_p7, %s2801_s30), 7  ;;  %p2806_p8 = scmp.ne.s32.totalorder %s3602_s21, 0 }
  0x19   : > { %s3730_s16 = scalar_lea.vmem %s5126_s0, %s2798_s13  ;;  %s478_s0 = scalar_lea.vmem %s5066_s2, %s5224_s30  ;;  %vm497_vm0 = vcmask (!%p2806_p8), 0   ;;  %vm499_vm1 = vcmask (!%p2806_p8), 523264   ;;  %v3620_v0 = vmov (!%p2806_p8), 0.0  }
  0x1a   : > { %496 = sbr.rel (%p2806_p8) target bundleno = 33 (0x21), region = 72  ;;  %498 = vst.msk [vmem:[#allocation2] sm:$0x1] (!%p2806_p8), %vm497_vm0, %v3620_v0 }
  0x1b   : > { %500 = vst.msk [vmem:[#allocation3] sm:$0xff] (!%p2806_p8), %vm499_vm1, %v3620_v0  ;;  %501 = vst.msk [vmem:[#allocation3 + $0x8] sm:$0xff] (!%p2806_p8), %vm499_vm1, %v3620_v0 }
  0x1c   : > { %502 = vst.msk [vmem:[#allocation3 + $0x10] sm:$0xff] (!%p2806_p8), %vm499_vm1, %v3620_v0  ;;  %503 = vst.msk [vmem:[#allocation3 + $0x18] sm:$0xff] (!%p2806_p8), %vm499_vm1, %v3620_v0 }
  0x21 PF: > { %v568_v1 = vld [vmem:[%s5068_s4] sm:$0x7]  ;;  %vm673_vm2 = vcmask 1042432   ;;  %vm576_vm3 = vcmask 23552   ;;  %v537_v3 = vld [vmem:[%s3740_s24 + $0x8] sm:$0xff]  ;;  %v538_v4 = vld [vmem:[%s3740_s24 + $0x10] sm:$0xff] }
  0x22   : > { %v536_v2 = vld [vmem:[%s3740_s24] sm:$0xff]  ;;  %3131 = vmatprep.subr.msk.mxu0 %vm673_vm2, %v568_v1  ;;  %3375 = vmatprep.subr.msk.mxu1 %vm673_vm2, %v568_v1  ;;  %v539_v5 = vld [vmem:[%s3740_s24 + $0x18] sm:$0xff]  ;;  %v541_v7 = vld [vmem:[%s3740_s24 + $0x28] sm:$0xff]  ;;  %s3621_s17 = smov 32   ;;  %vm1394_vm4 = vcmask 261120   ;;  %vm1442_vm5 = vcmask 523264  }
  0x23   : > { %3133 = vmatprep.mubr.msk.f32.mxu0 %vm576_vm3, %v536_v2  ;;  %3132 = vmatpush3.msk.msra.mxu0 %vm673_vm2, %v568_v1  ;;  %v540_v6 = vld [vmem:[%s3740_s24 + $0x20] sm:$0xff]  ;;  %v542_v8 = vld [vmem:[%s3740_s24 + $0x30] sm:$0xff]  ;;  %v565_v10 = vld [vmem:[%s3740_s24 + $0xe8] sm:$0xff]  ;;  %vm2641_vm6 = vcmask 0   ;;  %s2941_s28 = sshll.u32 %s3606_s22, 5  ;;  %p2958_p9 = scmp.ne.s32.totalorder %s3602_s21, 3 }
  0x24   : > { %3134 = vmatmul.mubr.msk.f32.vlgmr.msra.gmra.mrb[0].mxu0 %vm576_vm3, %v537_v3  ;;  %3376 = vmatpush3.msk.msra.mxu1 %vm673_vm2, %v568_v1  ;;  %v564_v9 = vld [vmem:[%s3740_s24 + $0xe0] sm:$0xff]  ;;  %v566_v11 = vld [vmem:[%s3740_s24 + $0xf0] sm:$0xff]  ;;  %v543_v12 = vld [vmem:[%s3740_s24 + $0x38] sm:$0xff] }
  0x25   : > { %3136 = vmatprep.mubr.msk.f32.mxu0 %vm576_vm3, %v538_v4  ;;  %3175 = vmatprep.mubr.msk.f32.mxu1 %vm576_vm3, %v564_v9  ;;  %v567_v13 = vld [vmem:[%s3740_s24 + $0xf8] sm:$0xff]  ;;  %v544_v14 = vld [vmem:[%s3740_s24 + $0x40] sm:$0xff]  ;;  %v545_v15 = vld [vmem:[%s3740_s24 + $0x48] sm:$0xff] }
  0x26   : > { %3176 = vmatmul.mubr.msk.f32.vlgmr.msra.gmra.mrb[0].mxu1 %vm576_vm3, %v565_v10  ;;  %v546_v16 = vld [vmem:[%s3740_s24 + $0x50] sm:$0xff]  ;;  %v547_v17 = vld [vmem:[%s3740_s24 + $0x58] sm:$0xff]  ;;  %v548_v18 = vld [vmem:[%s3740_s24 + $0x60] sm:$0xff] }
  0x27   : > { %3178 = vmatprep.mubr.msk.f32.mxu1 %vm576_vm3, %v566_v11  ;;  %v549_v19 = vld [vmem:[%s3740_s24 + $0x68] sm:$0xff]  ;;  %v550_v20 = vld [vmem:[%s3740_s24 + $0x70] sm:$0xff]  ;;  %v551_v21 = vld [vmem:[%s3740_s24 + $0x78] sm:$0xff] }
  0x28   : > { %3137 = vmatmul.mubr.msk.f32.gmra.mrb[2].mxu0 %vm576_vm3, %v539_v5  ;;  %v552_v22 = vld [vmem:[%s3740_s24 + $0x80] sm:$0xff]  ;;  %v553_v23 = vld [vmem:[%s3740_s24 + $0x88] sm:$0xff]  ;;  %v554_v24 = vld [vmem:[%s3740_s24 + $0x90] sm:$0xff] }
  0x29   : > { %3139 = vmatprep.mubr.msk.f32.mxu0 %vm576_vm3, %v540_v6  ;;  %v555_v25 = vld [vmem:[%s3740_s24 + $0x98] sm:$0xff]  ;;  %v556_v26 = vld [vmem:[%s3740_s24 + $0xa0] sm:$0xff]  ;;  %v557_v27 = vld [vmem:[%s3740_s24 + $0xa8] sm:$0xff] }
  0x2a   : > { %3179 = vmatmul.mubr.msk.f32.gmra.mrb[2].mxu1 %vm576_vm3, %v567_v13  ;;  %v558_v28 = vld [vmem:[%s3740_s24 + $0xb0] sm:$0xff]  ;;  %v559_v29 = vld [vmem:[%s3740_s24 + $0xb8] sm:$0xff]  ;;  %v560_v30 = vld [vmem:[%s3740_s24 + $0xc0] sm:$0xff] }
  0x2b   : > { %v561_v31 = vld [vmem:[%s3740_s24 + $0xc8] sm:$0xff]  ;;  %v562_v32 = vld [vmem:[%s3740_s24 + $0xd0] sm:$0xff]  ;;  %v563_v33 = vld [vmem:[%s3740_s24 + $0xd8] sm:$0xff] }
  0x2c   : > { %3140 = vmatmul.mubr.msk.f32.gmra.mrb[4].mxu0 %vm576_vm3, %v541_v7  ;;  %v934_v34 = vld [vmem:[%s5070_s6] sm:$0x7]  ;;  %v3834_v36 = vld [vmem:[%s3735_s20 + $0x10] sm:$0xff]  ;;  %v3841_v37 = vld [vmem:[%s3735_s20 + $0x8] sm:$0xff] }
  0x2d   : > { %3142 = vmatprep.mubr.msk.f32.mxu0 %vm576_vm3, %v542_v8  ;;  %3181 = vmatprep.subr.msk.mxu1 %vm673_vm2, %v934_v34  ;;  %v3831_v35 = vld [vmem:[%s3735_s20] sm:$0xff]  ;;  %v3844_v38 = vld [vmem:[%s3735_s20 + $0x18] sm:$0xff]  ;;  %v3851_v39 = vld [vmem:[%s3735_s20 + $0x28] sm:$0xff] }
  0x2e   : > { %3182 = vmatpush3.msk.msra.mxu1 %vm673_vm2, %v934_v34  ;;  %1298 = vrot.lane.b32.xlu0 %v3831_v35, %s3621_s17  ;;  %v3854_v40 = vld [vmem:[%s3735_s20 + $0x20] sm:$0xff]  ;;  %v3861_v41 = vld [vmem:[%s3735_s20 + $0x38] sm:$0xff]  ;;  %v3864_v42 = vld [vmem:[%s3735_s20 + $0x30] sm:$0xff] }
  0x2f   : > { %1302 = vrot.lane.b32.xlu1 %v3834_v36, %s3621_s17  ;;  %v1427_v43 = vld [vmem:[%s5072_s8] sm:$0xff]  ;;  %v1428_v44 = vld [vmem:[%s5072_s8 + $0x8] sm:$0xff]  ;;  %v1429_v45 = vld [vmem:[%s5072_s8 + $0x10] sm:$0xff] }
  0x30   : > { %3143 = vmatmul.mubr.msk.f32.gmra.mrb[6].mxu0 %vm576_vm3, %v543_v12  ;;  %v1430_v46 = vld [vmem:[%s5072_s8 + $0x18] sm:$0xff]  ;;  %v3351_v47 = vpack.c.bf16 %v1428_v44, %v1427_v43  ;;  %v3883_v48 = vld [vmem:[%s3735_s20 + $0x48] sm:$0xff]  ;;  %v3886_v49 = vld [vmem:[%s3735_s20 + $0x40] sm:$0xff] }
  0x31   : > { %3145 = vmatprep.mubr.msk.f32.mxu0 %vm576_vm3, %v544_v14  ;;  %v3355_v50 = vpack.c.bf16 %v1430_v46, %v1429_v45  ;;  %v1431_v51 = vld [vmem:[%s5072_s8 + $0x20] sm:$0xff]  ;;  %v1432_v52 = vld [vmem:[%s5072_s8 + $0x28] sm:$0xff]  ;;  %v3899_v53 = vld [vmem:[%s3735_s20 + $0x58] sm:$0xff] }
  0x32   : > { %1300 = vrot.lane.b32.xlu0 %v3841_v37, %s3621_s17  ;;  %3352 = vmatprep.subr.bf16.mxu0 %v3351_v47  ;;  %v3902_v54 = vld [vmem:[%s3735_s20 + $0x50] sm:$0xff]  ;;  %v3359_v55 = vpack.c.bf16 %v1432_v52, %v1431_v51  ;;  %v3909_v56 = vld [vmem:[%s3735_s20 + $0x68] sm:$0xff]  ;;  %v3912_v57 = vld [vmem:[%s3735_s20 + $0x60] sm:$0xff] }
  0x33   : > { %1304 = vrot.lane.b32.xlu1 %v3844_v38, %s3621_s17  ;;  %3354 = vmatpush3.bf16.msra.mxu0 %v3351_v47  ;;  %v3919_v58 = vld [vmem:[%s3735_s20 + $0x78] sm:$0xff]  ;;  %v3922_v59 = vld [vmem:[%s3735_s20 + $0x70] sm:$0xff]  ;;  %v3929_v60 = vld [vmem:[%s3735_s20 + $0x88] sm:$0xff] }
  0x34   : > { %3146 = vmatmul.mubr.msk.f32.gmra.mrb[8].mxu0 %vm576_vm3, %v545_v15  ;;  %3356 = vmatprep.subr.bf16.mxu0 %v3355_v50  ;;  %v3932_v61 = vld [vmem:[%s3735_s20 + $0x80] sm:$0xff]  ;;  %v3939_v62 = vld [vmem:[%s3735_s20 + $0x98] sm:$0xff]  ;;  %v3942_v63 = vld [vmem:[%s3735_s20 + $0x90] sm:$0xff] }
  0x35   : > { %3148 = vmatprep.mubr.msk.f32.mxu0 %vm576_vm3, %v546_v16  ;;  %v3949_v0 = vld [vmem:[%s3735_s20 + $0xa8] sm:$0xff]  ;;  %v3952_v1 = vld [vmem:[%s3735_s20 + $0xa0] sm:$0xff]  ;;  %v3959_v2 = vld [vmem:[%s3735_s20 + $0xb8] sm:$0xff] }
  0x36   : > { %1306 = vrot.lane.b32.xlu0 %v3854_v40, %s3621_s17  ;;  %v3962_v3 = vld [vmem:[%s3735_s20 + $0xb0] sm:$0xff]  ;;  %v3969_v4 = vld [vmem:[%s3735_s20 + $0xc8] sm:$0xff]  ;;  %v3972_v5 = vld [vmem:[%s3735_s20 + $0xc0] sm:$0xff] }
  0x37   : > { %1308 = vrot.lane.b32.xlu1 %v3851_v39, %s3621_s17  ;;  %3358 = vmatpush3.bf16.msra.mxu0 %v3355_v50  ;;  %v3979_v6 = vld [vmem:[%s3735_s20 + $0xd8] sm:$0xff]  ;;  %v3982_v7 = vld [vmem:[%s3735_s20 + $0xd0] sm:$0xff]  ;;  %v3989_v8 = vld [vmem:[%s3735_s20 + $0xe8] sm:$0xff] }
  0x38   : > { %3149 = vmatmul.mubr.msk.f32.gmra.mrb[10].mxu0 %vm576_vm3, %v547_v17  ;;  %3360 = vmatprep.subr.bf16.mxu0 %v3359_v55  ;;  %v3992_v9 = vld [vmem:[%s3735_s20 + $0xe0] sm:$0xff]  ;;  %v3999_v10 = vld [vmem:[%s3735_s20 + $0xf8] sm:$0xff]  ;;  %v4002_v11 = vld [vmem:[%s3735_s20 + $0xf0] sm:$0xff] }
  0x39   : > { %3151 = vmatprep.mubr.msk.f32.mxu0 %vm576_vm3, %v548_v18  ;;  %v4007_v12 = vld [vmem:[%s5069_s5] ss:$0 sm:$0xff] }
  0x3a   : > { %1310 = vrot.lane.b32.xlu0 %v3864_v42, %s3621_s17 }
  0x3b   : > { %1312 = vrot.lane.b32.xlu1 %v3861_v41, %s3621_s17  ;;  %3362 = vmatpush3.bf16.msra.mxu0 %v3359_v55 }
  0x3c   : > { %3152 = vmatmul.mubr.msk.f32.gmra.mrb[12].mxu0 %vm576_vm3, %v549_v19 }
  0x3d   : > { %3154 = vmatprep.mubr.msk.f32.mxu0 %vm576_vm3, %v550_v20 }
  0x3e   : > { %1314 = vrot.lane.b32.xlu0 %v3886_v49, %s3621_s17 }
  0x3f   : > { %1316 = vrot.lane.b32.xlu1 %v3883_v48, %s3621_s17 }
  0x40   : > { %3155 = vmatmul.mubr.msk.f32.gmra.mrb[14].mxu0 %vm576_vm3, %v551_v21 }
  0x41   : > { %3157 = vmatprep.mubr.msk.f32.mxu0 %vm576_vm3, %v552_v22 }
  0x42   : > { %1318 = vrot.lane.b32.xlu0 %v3902_v54, %s3621_s17 }
  0x43   : > { %1320 = vrot.lane.b32.xlu1 %v3899_v53, %s3621_s17 }
  0x44   : > { %3158 = vmatmul.mubr.msk.f32.gmra.mrb[16].mxu0 %vm576_vm3, %v553_v23 }
  0x45   : > { %3160 = vmatprep.mubr.msk.f32.mxu0 %vm576_vm3, %v554_v24 }
  0x46   : > { %1322 = vrot.lane.b32.xlu0 %v3912_v57, %s3621_s17 }
  0x47   : > { %1324 = vrot.lane.b32.xlu1 %v3909_v56, %s3621_s17 }
  0x48   : > { %3161 = vmatmul.mubr.msk.f32.gmra.mrb[18].mxu0 %vm576_vm3, %v555_v25 }
  0x49   : > { %3163 = vmatprep.mubr.msk.f32.mxu0 %vm576_vm3, %v556_v26 }
  0x4a   : > { %1326 = vrot.lane.b32.xlu0 %v3922_v59, %s3621_s17 }
  0x4b   : > { %1328 = vrot.lane.b32.xlu1 %v3919_v58, %s3621_s17 }
  0x4c   : > { %3164 = vmatmul.mubr.msk.f32.gmra.mrb[20].mxu0 %vm576_vm3, %v557_v27 }
  0x4d   : > { %3166 = vmatprep.mubr.msk.f32.mxu0 %vm576_vm3, %v558_v28 }
  0x4e   : > { %1330 = vrot.lane.b32.xlu0 %v3932_v61, %s3621_s17 }
  0x4f   : > { %1332 = vrot.lane.b32.xlu1 %v3929_v60, %s3621_s17 }
  0x50   : > { %3167 = vmatmul.mubr.msk.f32.gmra.mrb[22].mxu0 %vm576_vm3, %v559_v29 }
  0x51   : > { %3169 = vmatprep.mubr.msk.f32.mxu0 %vm576_vm3, %v560_v30 }
  0x52   : > { %1334 = vrot.lane.b32.xlu0 %v3942_v63, %s3621_s17 }
  0x53   : > { %1336 = vrot.lane.b32.xlu1 %v3939_v62, %s3621_s17 }
  0x54   : > { %3170 = vmatmul.mubr.msk.f32.gmra.mrb[24].mxu0 %vm576_vm3, %v561_v31 }
  0x55   : > { %3172 = vmatprep.mubr.msk.f32.mxu0 %vm576_vm3, %v562_v32 }
  0x56   : > { %1338 = vrot.lane.b32.xlu0 %v3952_v1, %s3621_s17 }
  0x57   : > { %1340 = vrot.lane.b32.xlu1 %v3949_v0, %s3621_s17 }
  0x58   : > { %3173 = vmatmul.mubr.msk.f32.gmra.mrb[26].mxu0 %vm576_vm3, %v563_v33 }
  0x5a   : > { %1342 = vrot.lane.b32.xlu0 %v3962_v3, %s3621_s17 }
  0x5b   : > { %1344 = vrot.lane.b32.xlu1 %v3959_v2, %s3621_s17 }
  0x5e   : > { %1346 = vrot.lane.b32.xlu0 %v3972_v5, %s3621_s17 }
  0x5f   : > { %1348 = vrot.lane.b32.xlu1 %v3969_v4, %s3621_s17 }
  0x62   : > { %1350 = vrot.lane.b32.xlu0 %v3982_v7, %s3621_s17 }
  0x63   : > { %1352 = vrot.lane.b32.xlu1 %v3979_v6, %s3621_s17 }
  0x66   : > { %1354 = vrot.lane.b32.xlu0 %v3992_v9, %s3621_s17 }
  0x67   : > { %1356 = vrot.lane.b32.xlu1 %v3989_v8, %s3621_s17 }
  0x6a   : > { %1358 = vrot.lane.b32.xlu0 %v4002_v11, %s3621_s17 }
  0x6b   : > { %1360 = vrot.lane.b32.xlu1 %v3999_v10, %s3621_s17 }
  0xf7   : > { %v3135_v13 = vpop.f32.mrb[0].mxu0 }
  0xf8   : > { %v749_v14 = vadd.f32 %v3135_v13, %v4007_v12  ;;  %v743_v15 = vpop.f32.mrb[1].mxu0 }
  0xf9   : > { %v744_v16 = vadd.f32 %v4007_v12, %v743_v15  ;;  %v4019_v25 = vpop.f32.mrb[0].mxu1 }
  0xfa   : > { %v903_v19 = vmax.f32 %v749_v14, 0.0  ;;  %v4022_v29 = vpop.f32.mrb[1].mxu1 }
  0xfb   : > { %v902_v17 = vmax.f32 %v744_v16, 0.0  ;;  %v3138_v18 = vpop.f32.mrb[2].mxu0 }
  0xfc   : > { %v759_v20 = vadd.f32 %v3138_v18, %v4007_v12  ;;  %v753_v21 = vpop.f32.mrb[3].mxu0 }
  0xfd   : > { %v754_v22 = vadd.f32 %v4007_v12, %v753_v21  ;;  %3183 = vmatprep.mubr.msk.f32.mxu1 %vm576_vm3, %v902_v17  ;;  %v4027_v33 = vpop.f32.mrb[2].mxu1 }
  0xfe   : > { %3184 = vmatmul.mubr.msk.f32.vlgmr.msra.gmra.mrb[4].mxu1 %vm576_vm3, %v903_v19  ;;  %v905_v26 = vmax.f32 %v759_v20, 0.0  ;;  %v4030_v45 = vpop.f32.mrb[3].mxu1 }
  0xff   : > { %v904_v23 = vmax.f32 %v754_v22, 0.0  ;;  %v3141_v24 = vpop.f32.mrb[4].mxu0 }
 0x100   : > { %v769_v27 = vadd.f32 %v3141_v24, %v4007_v12  ;;  %v763_v28 = vpop.f32.mrb[5].mxu0 }
 0x101   : > { %v764_v30 = vadd.f32 %v4007_v12, %v763_v28  ;;  %3186 = vmatprep.mubr.msk.f32.mxu1 %vm576_vm3, %v904_v23 }
 0x102   : > { %3187 = vmatmul.mubr.msk.f32.gmra.mrb[6].mxu1 %vm576_vm3, %v905_v26  ;;  %v907_v34 = vmax.f32 %v769_v27, 0.0 }
 0x103   : > { %v906_v31 = vmax.f32 %v764_v30, 0.0  ;;  %v3144_v32 = vpop.f32.mrb[6].mxu0 }
 0x104   : > { %v779_v43 = vadd.f32 %v3144_v32, %v4007_v12  ;;  %v773_v44 = vpop.f32.mrb[7].mxu0 }
 0x105   : > { %v774_v46 = vadd.f32 %v4007_v12, %v773_v44  ;;  %3189 = vmatprep.mubr.msk.f32.mxu1 %vm576_vm3, %v906_v31 }
 0x106   : > { %3190 = vmatmul.mubr.msk.f32.gmra.mrb[8].mxu1 %vm576_vm3, %v907_v34  ;;  %v909_v51 = vmax.f32 %v779_v43, 0.0 }
 0x107   : > { %v908_v47 = vmax.f32 %v774_v46, 0.0  ;;  %v3147_v50 = vpop.f32.mrb[8].mxu0 }
 0x108   : > { %v789_v52 = vadd.f32 %v3147_v50, %v4007_v12  ;;  %v783_v55 = vpop.f32.mrb[9].mxu0 }
 0x109   : > { %v784_v13 = vadd.f32 %v4007_v12, %v783_v55  ;;  %3192 = vmatprep.mubr.msk.f32.mxu1 %vm576_vm3, %v908_v47 }
 0x10a   : > { %3193 = vmatmul.mubr.msk.f32.gmra.mrb[10].mxu1 %vm576_vm3, %v909_v51  ;;  %v911_v16 = vmax.f32 %v789_v52, 0.0 }
 0x10b   : > { %v910_v14 = vmax.f32 %v784_v13, 0.0  ;;  %v3150_v15 = vpop.f32.mrb[10].mxu0 }
 0x10c   : > { %v799_v17 = vadd.f32 %v3150_v15, %v4007_v12  ;;  %v793_v18 = vpop.f32.mrb[11].mxu0 }
 0x10d   : > { %v794_v19 = vadd.f32 %v4007_v12, %v793_v18  ;;  %3195 = vmatprep.mubr.msk.f32.mxu1 %vm576_vm3, %v910_v14 }
 0x10e   : > { %3196 = vmatmul.mubr.msk.f32.gmra.mrb[12].mxu1 %vm576_vm3, %v911_v16  ;;  %v913_v22 = vmax.f32 %v799_v17, 0.0 }
 0x10f   : > { %v912_v20 = vmax.f32 %v794_v19, 0.0  ;;  %v3153_v21 = vpop.f32.mrb[12].mxu0 }
 0x110   : > { %v809_v23 = vadd.f32 %v3153_v21, %v4007_v12  ;;  %v803_v24 = vpop.f32.mrb[13].mxu0 }
 0x111   : > { %v804_v26 = vadd.f32 %v4007_v12, %v803_v24  ;;  %3198 = vmatprep.mubr.msk.f32.mxu1 %vm576_vm3, %v912_v20 }
 0x112   : > { %3199 = vmatmul.mubr.msk.f32.gmra.mrb[14].mxu1 %vm576_vm3, %v913_v22  ;;  %v915_v30 = vmax.f32 %v809_v23, 0.0 }
 0x113   : > { %v914_v27 = vmax.f32 %v804_v26, 0.0  ;;  %v3156_v28 = vpop.f32.mrb[14].mxu0 }
 0x114   : > { %v819_v31 = vadd.f32 %v3156_v28, %v4007_v12  ;;  %v813_v32 = vpop.f32.mrb[15].mxu0 }
 0x115   : > { %v814_v34 = vadd.f32 %v4007_v12, %v813_v32  ;;  %3201 = vmatprep.mubr.msk.f32.mxu1 %vm576_vm3, %v914_v27 }
 0x116   : > { %3202 = vmatmul.mubr.msk.f32.gmra.mrb[16].mxu1 %vm576_vm3, %v915_v30  ;;  %v917_v46 = vmax.f32 %v819_v31, 0.0 }
 0x117   : > { %v916_v43 = vmax.f32 %v814_v34, 0.0  ;;  %v3159_v44 = vpop.f32.mrb[16].mxu0 }
 0x118   : > { %v829_v47 = vadd.f32 %v3159_v44, %v4007_v12  ;;  %v823_v50 = vpop.f32.mrb[17].mxu0 }
 0x119   : > { %v824_v51 = vadd.f32 %v4007_v12, %v823_v50  ;;  %3204 = vmatprep.mubr.msk.f32.mxu1 %vm576_vm3, %v916_v43 }
 0x11a   : > { %3205 = vmatmul.mubr.msk.f32.gmra.mrb[18].mxu1 %vm576_vm3, %v917_v46  ;;  %v919_v13 = vmax.f32 %v829_v47, 0.0 }
 0x11b   : > { %v918_v52 = vmax.f32 %v824_v51, 0.0  ;;  %v3162_v55 = vpop.f32.mrb[18].mxu0  ;;  %v884_v51 = vadd.f32 %v4007_v12, %v4022_v29 }
 0x11c   : > { %v839_v14 = vadd.f32 %v3162_v55, %v4007_v12  ;;  %v833_v15 = vpop.f32.mrb[19].mxu0 }
 0x11d   : > { %v834_v16 = vadd.f32 %v4007_v12, %v833_v15  ;;  %3207 = vmatprep.mubr.msk.f32.mxu1 %vm576_vm3, %v918_v52 }
 0x11e   : > { %3208 = vmatmul.mubr.msk.f32.gmra.mrb[20].mxu1 %vm576_vm3, %v919_v13  ;;  %v921_v19 = vmax.f32 %v839_v14, 0.0 }
 0x11f   : > { %v920_v17 = vmax.f32 %v834_v16, 0.0  ;;  %v3165_v18 = vpop.f32.mrb[20].mxu0  ;;  %v930_v16 = vmax.f32 %v884_v51, 0.0 }
 0x120   : > { %v849_v20 = vadd.f32 %v3165_v18, %v4007_v12  ;;  %v843_v21 = vpop.f32.mrb[21].mxu0 }
 0x121   : > { %v844_v22 = vadd.f32 %v4007_v12, %v843_v21  ;;  %3210 = vmatprep.mubr.msk.f32.mxu1 %vm576_vm3, %v920_v17  ;;  %v894_v17 = vadd.f32 %v4007_v12, %v4030_v45  ;;  %v899_v21 = vadd.f32 %v4027_v33, %v4007_v12  ;;  %v1299_v33 = vpop.permute.xlu0 %1298 }
 0x122   : > { %3211 = vmatmul.mubr.msk.f32.gmra.mrb[22].mxu1 %vm576_vm3, %v921_v19  ;;  %v923_v26 = vmax.f32 %v849_v20, 0.0  ;;  %v889_v19 = vadd.f32 %v4019_v25, %v4007_v12  ;;  %v1433_v25 = vld [vmem:[%s5072_s8 + $0x30] sm:$0xff] }
 0x123   : > { %v922_v23 = vmax.f32 %v844_v22, 0.0  ;;  %v3168_v24 = vpop.f32.mrb[22].mxu0  ;;  %v932_v29 = vmax.f32 %v894_v17, 0.0  ;;  %v933_v45 = vmax.f32 %v899_v21, 0.0  ;;  %v1434_v22 = vld [vmem:[%s5072_s8 + $0x38] sm:$0xff] }
 0x124   : > { %v859_v27 = vadd.f32 %v3168_v24, %v4007_v12  ;;  %v853_v28 = vpop.f32.mrb[23].mxu0  ;;  %v931_v20 = vmax.f32 %v889_v19, 0.0 }
 0x125   : > { %v854_v30 = vadd.f32 %v4007_v12, %v853_v28  ;;  %3213 = vmatprep.mubr.msk.f32.mxu1 %vm576_vm3, %v922_v23  ;;  %v3363_v23 = vpack.c.bf16 %v1434_v22, %v1433_v25 }
 0x126   : > { %3214 = vmatmul.mubr.msk.f32.gmra.mrb[24].mxu1 %vm576_vm3, %v923_v26  ;;  %v925_v34 = vmax.f32 %v859_v27, 0.0  ;;  %v1301_v26 = vpop.permute.xlu0 %1300 }
 0x127   : > { %v924_v31 = vmax.f32 %v854_v30, 0.0  ;;  %v3171_v32 = vpop.f32.mrb[24].mxu0  ;;  %3364 = vmatprep.subr.bf16.mxu0 %v3363_v23 }
 0x128   : > { %v869_v43 = vadd.f32 %v3171_v32, %v4007_v12  ;;  %v863_v44 = vpop.f32.mrb[25].mxu0  ;;  %3366 = vmatpush3.bf16.msra.mxu0 %v3363_v23 }
 0x129   : > { %v864_v46 = vadd.f32 %v4007_v12, %v863_v44  ;;  %3216 = vmatprep.mubr.msk.f32.mxu1 %vm576_vm3, %v924_v31 }
 0x12a   : > { %3217 = vmatmul.mubr.msk.f32.gmra.mrb[26].mxu1 %vm576_vm3, %v925_v34  ;;  %v927_v52 = vmax.f32 %v869_v43, 0.0  ;;  %v1307_v27 = vpop.permute.xlu0 %1306  ;;  %v4100_v43 = vld [vmem:[%s5071_s7] ss:$0 sm:$0xff] }
 0x12b   : > { %v926_v47 = vmax.f32 %v864_v46, 0.0  ;;  %v3174_v50 = vpop.f32.mrb[26].mxu0 }
 0x12c   : > { %v879_v55 = vadd.f32 %v3174_v50, %v4007_v12  ;;  %v873_v13 = vpop.f32.mrb[27].mxu0 }
 0x12d   : > { %v874_v14 = vadd.f32 %v4007_v12, %v873_v13  ;;  %3219 = vmatprep.mubr.msk.f32.mxu1 %vm576_vm3, %v926_v47  ;;  %v1303_v12 = vpop.permute.xlu1 %1302 }
 0x12e   : > { %3220 = vmatmul.mubr.msk.f32.gmra.mrb[28].mxu1 %vm576_vm3, %v927_v52  ;;  %v929_v18 = vmax.f32 %v879_v55, 0.0  ;;  %v1311_v30 = vpop.permute.xlu0 %1310 }
 0x12f   : > { %v928_v15 = vmax.f32 %v874_v14, 0.0 }
 0x131   : > { %3222 = vmatprep.mubr.msk.f32.mxu1 %vm576_vm3, %v928_v15  ;;  %v1305_v24 = vpop.permute.xlu1 %1304 }
 0x132   : > { %3223 = vmatmul.mubr.msk.f32.gmra.mrb[30].mxu1 %vm576_vm3, %v929_v18  ;;  %v1315_v32 = vpop.permute.xlu0 %1314 }
 0x133   : > { %3225 = vmatprep.mubr.msk.f32.mxu1 %vm576_vm3, %v930_v16 }
 0x135   : > { %v1309_v28 = vpop.permute.xlu1 %1308 }
 0x136   : > { %3226 = vmatmul.mubr.msk.f32.gmra.mrb[32].mxu1 %vm576_vm3, %v931_v20 }
 0x137   : > { %3228 = vmatprep.mubr.msk.f32.mxu1 %vm576_vm3, %v932_v29 }
 0x139   : > { %v1313_v31 = vpop.permute.xlu1 %1312 }
 0x13a   : > { %3229 = vmatmul.mubr.msk.f32.gmra.mrb[34].mxu1 %vm576_vm3, %v933_v45 }
 0x13b   : > { %3303 = vmatprep.mubr.msk.f32.mxu1 %vm1394_vm4, %v3831_v35  ;;  %v1319_v35 = vpop.permute.xlu0 %1318 }
 0x13d   : > { %v1317_v34 = vpop.permute.xlu1 %1316 }
 0x13f   : > { %v1323_v17 = vpop.permute.xlu0 %1322 }
 0x141   : > { %v1321_v51 = vpop.permute.xlu1 %1320 }
 0x145   : > { %v1325_v29 = vpop.permute.xlu1 %1324 }
 0x1d1   : > { %v3185_v44 = vpop.f32.mrb[4].mxu1 }
 0x1d2   : > { %v1113_v46 = vadd.f32 %v3185_v44, %v4100_v43  ;;  %v1107_v47 = vpop.f32.mrb[5].mxu1 }
 0x1d3   : > { %v1108_v50 = vadd.f32 %v4100_v43, %v1107_v47 }
 0x1d4   : > { %v1396_v13 = vsel %vm1394_vm4, %v1113_v46, %v1301_v26  ;;  %v1329_v46 = vpop.permute.xlu1 %1328 }
 0x1d5   : > { %v3188_v52 = vpop.f32.mrb[6].mxu1  ;;  %v1395_v55 = vsel %vm1394_vm4, %v1108_v50, %v1299_v33 }
 0x1d6   : > { %v1123_v14 = vadd.f32 %v3188_v52, %v4100_v43  ;;  %v1117_v15 = vpop.f32.mrb[7].mxu1  ;;  %3247 = vmatprep.mubr.msk.f32.mxu0 %vm1442_vm5, %v1395_v55 }
 0x1d7   : > { %v1118_v16 = vadd.f32 %v4100_v43, %v1117_v15  ;;  %3248 = vmatmul.mubr.msk.f32.vlgmr.msra.gmra.mrb[28].mxu0 %vm1442_vm5, %v1396_v13 }
 0x1d8   : > { %v1398_v20 = vsel %vm1394_vm4, %v1123_v14, %v1305_v24  ;;  %v1327_v24 = vpop.permute.xlu0 %1326 }
 0x1d9   : > { %v3191_v18 = vpop.f32.mrb[8].mxu1  ;;  %v1397_v19 = vsel %vm1394_vm4, %v1118_v16, %v1303_v12  ;;  %v1333_v16 = vpop.permute.xlu1 %1332 }
 0x1da   : > { %v1133_v21 = vadd.f32 %v3191_v18, %v4100_v43  ;;  %v1127_v45 = vpop.f32.mrb[9].mxu1  ;;  %3250 = vmatprep.mubr.msk.f32.mxu0 %vm1442_vm5, %v1397_v19 }
 0x1db   : > { %v1128_v25 = vadd.f32 %v4100_v43, %v1127_v45  ;;  %3251 = vmatmul.mubr.msk.f32.gmra.mrb[30].mxu0 %vm1442_vm5, %v1398_v20 }
 0x1dc   : > { %v1400_v33 = vsel %vm1394_vm4, %v1133_v21, %v1309_v28  ;;  %v1331_v13 = vpop.permute.xlu0 %1330 }
 0x1dd   : > { %v1399_v22 = vsel %vm1394_vm4, %v1128_v25, %v1307_v27  ;;  %v3194_v23 = vpop.f32.mrb[10].mxu1 }
 0x1de   : > { %v1143_v26 = vadd.f32 %v3194_v23, %v4100_v43  ;;  %v1137_v12 = vpop.f32.mrb[11].mxu1  ;;  %3253 = vmatprep.mubr.msk.f32.mxu0 %vm1442_vm5, %v1399_v22  ;;  %v1337_v23 = vpop.permute.xlu1 %1336 }
 0x1df   : > { %v1138_v44 = vadd.f32 %v4100_v43, %v1137_v12  ;;  %3254 = vmatmul.mubr.msk.f32.gmra.mrb[32].mxu0 %vm1442_vm5, %v1400_v33 }
 0x1e0   : > { %v1402_v52 = vsel %vm1394_vm4, %v1143_v26, %v1313_v31 }
 0x1e1   : > { %v1401_v47 = vsel %vm1394_vm4, %v1138_v44, %v1311_v30  ;;  %v3197_v50 = vpop.f32.mrb[12].mxu1 }
 0x1e2   : > { %v1153_v27 = vadd.f32 %v3197_v50, %v4100_v43  ;;  %v1147_v55 = vpop.f32.mrb[13].mxu1  ;;  %3256 = vmatprep.mubr.msk.f32.mxu0 %vm1442_vm5, %v1401_v47 }
 0x1e3   : > { %v1148_v28 = vadd.f32 %v4100_v43, %v1147_v55  ;;  %3257 = vmatmul.mubr.msk.f32.gmra.mrb[34].mxu0 %vm1442_vm5, %v1402_v52 }
 0x1e4   : > { %v1404_v18 = vsel %vm1394_vm4, %v1153_v27, %v1317_v34  ;;  %v1335_v34 = vpop.permute.xlu0 %1334  ;;  %v1341_v27 = vpop.permute.xlu1 %1340 }
 0x1e5   : > { %v1403_v14 = vsel %vm1394_vm4, %v1148_v28, %v1315_v32  ;;  %v3200_v15 = vpop.f32.mrb[14].mxu1 }
 0x1e6   : > { %v1163_v30 = vadd.f32 %v3200_v15, %v4100_v43  ;;  %v1157_v19 = vpop.f32.mrb[15].mxu1  ;;  %3259 = vmatprep.mubr.msk.f32.mxu0 %vm1442_vm5, %v1403_v14 }
 0x1e7   : > { %v1158_v31 = vadd.f32 %v4100_v43, %v1157_v19  ;;  %3260 = vmatmul.mubr.msk.f32.gmra.mrb[36].mxu0 %vm1442_vm5, %v1404_v18 }
 0x1e8   : > { %v1406_v45 = vsel %vm1394_vm4, %v1163_v30, %v1321_v51  ;;  %v1339_v47 = vpop.permute.xlu0 %1338 }
 0x1e9   : > { %v1405_v20 = vsel %vm1394_vm4, %v1158_v31, %v1319_v35  ;;  %v3203_v21 = vpop.f32.mrb[16].mxu1  ;;  %v1345_v31 = vpop.permute.xlu1 %1344 }
 0x1ea   : > { %v1173_v32 = vadd.f32 %v3203_v21, %v4100_v43  ;;  %v1167_v25 = vpop.f32.mrb[17].mxu1  ;;  %3262 = vmatprep.mubr.msk.f32.mxu0 %vm1442_vm5, %v1405_v20 }
 0x1eb   : > { %v1168_v22 = vadd.f32 %v4100_v43, %v1167_v25  ;;  %3263 = vmatmul.mubr.msk.f32.gmra.mrb[38].mxu0 %vm1442_vm5, %v1406_v45 }
 0x1ec   : > { %v1408_v12 = vsel %vm1394_vm4, %v1173_v32, %v1325_v29 }
 0x1ed   : > { %v1407_v33 = vsel %vm1394_vm4, %v1168_v22, %v1323_v17  ;;  %v3206_v26 = vpop.f32.mrb[18].mxu1 }
 0x1ee   : > { %v1183_v35 = vadd.f32 %v3206_v26, %v4100_v43  ;;  %v1177_v44 = vpop.f32.mrb[19].mxu1  ;;  %3265 = vmatprep.mubr.msk.f32.mxu0 %vm1442_vm5, %v1407_v33  ;;  %v1349_v26 = vpop.permute.xlu1 %1348 }
 0x1ef   : > { %v1178_v51 = vadd.f32 %v4100_v43, %v1177_v44  ;;  %3266 = vmatmul.mubr.msk.f32.gmra.mrb[40].mxu0 %vm1442_vm5, %v1408_v12 }
 0x1f0   : > { %v1410_v55 = vsel %vm1394_vm4, %v1183_v35, %v1329_v46  ;;  %v1343_v46 = vpop.permute.xlu0 %1342 }
 0x1f1   : > { %v1409_v50 = vsel %vm1394_vm4, %v1178_v51, %v1327_v24  ;;  %v3209_v52 = vpop.f32.mrb[20].mxu1 }
 0x1f2   : > { %v1193_v17 = vadd.f32 %v3209_v52, %v4100_v43  ;;  %v1187_v28 = vpop.f32.mrb[21].mxu1  ;;  %3268 = vmatprep.mubr.msk.f32.mxu0 %vm1442_vm5, %v1409_v50 }
 0x1f3   : > { %v1188_v29 = vadd.f32 %v4100_v43, %v1187_v28  ;;  %3269 = vmatmul.mubr.msk.f32.gmra.mrb[42].mxu0 %vm1442_vm5, %v1410_v55 }
 0x1f4   : > { %v1412_v18 = vsel %vm1394_vm4, %v1193_v17, %v1333_v16  ;;  %v1347_v25 = vpop.permute.xlu0 %1346  ;;  %v1353_v17 = vpop.permute.xlu1 %1352 }
 0x1f5   : > { %v1411_v14 = vsel %vm1394_vm4, %v1188_v29, %v1331_v13  ;;  %v3212_v15 = vpop.f32.mrb[22].mxu1 }
 0x1f6   : > { %v1203_v24 = vadd.f32 %v3212_v15, %v4100_v43  ;;  %v1197_v30 = vpop.f32.mrb[23].mxu1  ;;  %3271 = vmatprep.mubr.msk.f32.mxu0 %vm1442_vm5, %v1411_v14 }
 0x1f7   : > { %v1198_v19 = vadd.f32 %v4100_v43, %v1197_v30  ;;  %3272 = vmatmul.mubr.msk.f32.gmra.mrb[44].mxu0 %vm1442_vm5, %v1412_v18 }
 0x1f8   : > { %v1414_v45 = vsel %vm1394_vm4, %v1203_v24, %v1337_v23 }
 0x1f9   : > { %v1413_v20 = vsel %vm1394_vm4, %v1198_v19, %v1335_v34  ;;  %v3215_v21 = vpop.f32.mrb[24].mxu1 }
 0x1fa   : > { %v1213_v13 = vadd.f32 %v3215_v21, %v4100_v43  ;;  %v1207_v32 = vpop.f32.mrb[25].mxu1  ;;  %3274 = vmatprep.mubr.msk.f32.mxu0 %vm1442_vm5, %v1413_v20 }
 0x1fb   : > { %v1208_v16 = vadd.f32 %v4100_v43, %v1207_v32  ;;  %3275 = vmatmul.mubr.msk.f32.gmra.mrb[46].mxu0 %vm1442_vm5, %v1414_v45 }
 0x1fc   : > { %v1416_v12 = vsel %vm1394_vm4, %v1213_v13, %v1341_v27  ;;  %v1351_v27 = vpop.permute.xlu0 %1350 }
 0x1fd   : > { %v1415_v22 = vsel %vm1394_vm4, %v1208_v16, %v1339_v47  ;;  %v3218_v33 = vpop.f32.mrb[26].mxu1 }
 0x1fe   : > { %v1223_v34 = vadd.f32 %v3218_v33, %v4100_v43  ;;  %v1217_v35 = vpop.f32.mrb[27].mxu1  ;;  %3277 = vmatprep.mubr.msk.f32.mxu0 %vm1442_vm5, %v1415_v22 }
 0x1ff   : > { %v1218_v23 = vadd.f32 %v4100_v43, %v1217_v35  ;;  %3278 = vmatmul.mubr.msk.f32.gmra.mrb[48].mxu0 %vm1442_vm5, %v1416_v12 }
 0x200   : > { %v1418_v50 = vsel %vm1394_vm4, %v1223_v34, %v1345_v31  ;;  %v1355_v30 = vpop.permute.xlu0 %1354  ;;  %v1357_v31 = vpop.permute.xlu1 %1356 }
 0x201   : > { %v1417_v44 = vsel %vm1394_vm4, %v1218_v23, %v1343_v46  ;;  %v3221_v51 = vpop.f32.mrb[28].mxu1 }
 0x202   : > { %v1233_v47 = vadd.f32 %v3221_v51, %v4100_v43  ;;  %v1227_v52 = vpop.f32.mrb[29].mxu1  ;;  %3280 = vmatprep.mubr.msk.f32.mxu0 %vm1442_vm5, %v1417_v44  ;;  %v1796_v44 = vld [vmem:[%s5074_s10] sm:$0xff]  ;;  %v1797_v51 = vld [vmem:[%s5074_s10 + $0x8] sm:$0xff] }
 0x203   : > { %v1228_v55 = vadd.f32 %v4100_v43, %v1227_v52  ;;  %3281 = vmatmul.mubr.msk.f32.gmra.mrb[50].mxu0 %vm1442_vm5, %v1418_v50  ;;  %v3367_v50 = vpack.c.bf16 %v1797_v51, %v1796_v44 }
 0x204   : > { %v1420_v14 = vsel %vm1394_vm4, %v1233_v47, %v1349_v26  ;;  %v1359_v26 = vpop.permute.xlu0 %1358  ;;  %v1361_v34 = vpop.permute.xlu1 %1360  ;;  %v1799_v47 = vld [vmem:[%s5074_s10 + $0x18] sm:$0xff] }
 0x205   : > { %v1419_v28 = vsel %vm1394_vm4, %v1228_v55, %v1347_v25  ;;  %v3224_v29 = vpop.f32.mrb[30].mxu1  ;;  %3368 = vmatprep.subr.bf16.mxu1 %v3367_v50 }
 0x206   : > { %v1243_v15 = vadd.f32 %v3224_v29, %v4100_v43  ;;  %v1237_v18 = vpop.f32.mrb[31].mxu1  ;;  %3283 = vmatprep.mubr.msk.f32.mxu0 %vm1442_vm5, %v1419_v28  ;;  %3370 = vmatpush3.bf16.msra.mxu1 %v3367_v50 }
 0x207   : > { %v1238_v24 = vadd.f32 %v4100_v43, %v1237_v18  ;;  %3284 = vmatmul.mubr.msk.f32.gmra.mrb[52].mxu0 %vm1442_vm5, %v1420_v14 }
 0x208   : > { %v1422_v20 = vsel %vm1394_vm4, %v1243_v15, %v1353_v17 }
 0x209   : > { %v1421_v46 = vsel %vm1394_vm4, %v1238_v24, %v1351_v27  ;;  %v3227_v19 = vpop.f32.mrb[32].mxu1 }
 0x20a   : > { %v1253_v21 = vadd.f32 %v3227_v19, %v4100_v43  ;;  %v1247_v45 = vpop.f32.mrb[33].mxu1  ;;  %3286 = vmatprep.mubr.msk.f32.mxu0 %vm1442_vm5, %v1421_v46 }
 0x20b   : > { %v1248_v13 = vadd.f32 %v4100_v43, %v1247_v45  ;;  %3287 = vmatmul.mubr.msk.f32.gmra.mrb[54].mxu0 %vm1442_vm5, %v1422_v20 }
 0x20c   : > { %v1424_v25 = vsel %vm1394_vm4, %v1253_v21, %v1357_v31 }
 0x20d   : > { %v1423_v32 = vsel %vm1394_vm4, %v1248_v13, %v1355_v30  ;;  %v3230_v16 = vpop.f32.mrb[34].mxu1 }
 0x20e   : > { %v1263_v22 = vadd.f32 %v3230_v16, %v4100_v43  ;;  %v1257_v33 = vpop.f32.mrb[35].mxu1  ;;  %3289 = vmatprep.mubr.msk.f32.mxu0 %vm1442_vm5, %v1423_v32 }
 0x20f   : > { %v1258_v12 = vadd.f32 %v4100_v43, %v1257_v33  ;;  %3290 = vmatmul.mubr.msk.f32.gmra.mrb[56].mxu0 %vm1442_vm5, %v1424_v25  ;;  %v1798_v43 = vld [vmem:[%s5074_s10 + $0x10] sm:$0xff] }
 0x210   : > { %v1426_v23 = vsel %vm1394_vm4, %v1263_v22, %v1361_v34  ;;  %v3371_v52 = vpack.c.bf16 %v1799_v47, %v1798_v43 }
 0x211   : > { %v1425_v35 = vsel %vm1394_vm4, %v1258_v12, %v1359_v26 }
 0x212   : > { %3292 = vmatprep.mubr.msk.f32.mxu0 %vm1442_vm5, %v1425_v35  ;;  %3372 = vmatprep.subr.bf16.mxu1 %v3371_v52 }
 0x213   : > { %3293 = vmatmul.mubr.msk.f32.gmra.mrb[58].mxu0 %vm1442_vm5, %v1426_v23  ;;  %3374 = vmatpush3.bf16.msra.mxu1 %v3371_v52 }
 0x216   : > { %3304 = vmatmul.mubr.msk.f32.vlgmr.msra.gmra.mrb[36].mxu1 %vm1394_vm4, %v3841_v37 }
 0x217   : > { %3306 = vmatprep.mubr.msk.f32.mxu1 %vm1394_vm4, %v3834_v36 }
 0x21a   : > { %3307 = vmatmul.mubr.msk.f32.gmra.mrb[38].mxu1 %vm1394_vm4, %v3844_v38 }
 0x21b   : > { %3309 = vmatprep.mubr.msk.f32.mxu1 %vm1394_vm4, %v3854_v40 }
 0x21e   : > { %3310 = vmatmul.mubr.msk.f32.gmra.mrb[40].mxu1 %vm1394_vm4, %v3851_v39 }
 0x21f   : > { %3312 = vmatprep.mubr.msk.f32.mxu1 %vm1394_vm4, %v3864_v42 }
 0x222   : > { %3313 = vmatmul.mubr.msk.f32.gmra.mrb[42].mxu1 %vm1394_vm4, %v3861_v41 }
 0x223   : > { %3315 = vmatprep.mubr.msk.f32.mxu1 %vm1394_vm4, %v3886_v49 }
 0x226   : > { %3316 = vmatmul.mubr.msk.f32.gmra.mrb[44].mxu1 %vm1394_vm4, %v3883_v48 }
 0x227   : > { %3318 = vmatprep.mubr.msk.f32.mxu1 %vm1394_vm4, %v3902_v54 }
 0x22a   : > { %3319 = vmatmul.mubr.msk.f32.gmra.mrb[46].mxu1 %vm1394_vm4, %v3899_v53 }
 0x22b   : > { %3321 = vmatprep.mubr.msk.f32.mxu1 %vm1394_vm4, %v3912_v57 }
 0x22e   : > { %3322 = vmatmul.mubr.msk.f32.gmra.mrb[48].mxu1 %vm1394_vm4, %v3909_v56 }
 0x22f   : > { %3324 = vmatprep.mubr.msk.f32.mxu1 %vm1394_vm4, %v3922_v59 }
 0x232   : > { %3325 = vmatmul.mubr.msk.f32.gmra.mrb[50].mxu1 %vm1394_vm4, %v3919_v58 }
 0x233   : > { %3327 = vmatprep.mubr.msk.f32.mxu1 %vm1394_vm4, %v3932_v61 }
 0x236   : > { %3328 = vmatmul.mubr.msk.f32.gmra.mrb[52].mxu1 %vm1394_vm4, %v3929_v60  ;;  %v4275_v60 = vld [vmem:[%s5073_s9] ss:$0 sm:$0xff] }
 0x237   : > { %3330 = vmatprep.mubr.msk.f32.mxu1 %vm1394_vm4, %v3942_v63 }
 0x23a   : > { %3331 = vmatmul.mubr.msk.f32.gmra.mrb[54].mxu1 %vm1394_vm4, %v3939_v62 }
 0x23b   : > { %3333 = vmatprep.mubr.msk.f32.mxu1 %vm1394_vm4, %v3952_v1 }
 0x23e   : > { %3334 = vmatmul.mubr.msk.f32.gmra.mrb[56].mxu1 %vm1394_vm4, %v3949_v0 }
 0x23f   : > { %3336 = vmatprep.mubr.msk.f32.mxu1 %vm1394_vm4, %v3962_v3 }
 0x242   : > { %3337 = vmatmul.mubr.msk.f32.gmra.mrb[58].mxu1 %vm1394_vm4, %v3959_v2 }
 0x243   : > { %3339 = vmatprep.mubr.msk.f32.mxu1 %vm1394_vm4, %v3972_v5 }
 0x246   : > { %3340 = vmatmul.mubr.msk.f32.gmra.mrb[60].mxu1 %vm1394_vm4, %v3969_v4 }
 0x247   : > { %3342 = vmatprep.mubr.msk.f32.mxu1 %vm1394_vm4, %v3982_v7 }
 0x24a   : > { %3343 = vmatmul.mubr.msk.f32.gmra.mrb[62].mxu1 %vm1394_vm4, %v3979_v6 }
 0x24b   : > { %3345 = vmatprep.mubr.msk.f32.mxu1 %vm1394_vm4, %v3992_v9 }
 0x24e   : > { %3346 = vmatmul.mubr.msk.f32.gmra.mrb[64].mxu1 %vm1394_vm4, %v3989_v8 }
 0x24f   : > { %3348 = vmatprep.mubr.msk.f32.mxu1 %vm1394_vm4, %v4002_v11 }
 0x252   : > { %3349 = vmatmul.mubr.msk.f32.gmra.mrb[66].mxu1 %vm1394_vm4, %v3999_v10 }
 0x2aa   : > { %v3249_v36 = vpop.f32.mrb[28].mxu0 }
 0x2ab   : > { %v1605_v37 = vpop.f32.mrb[29].mxu0  ;;  %v4278_v62 = vadd.f32 %v3249_v36, %v4275_v60 }
 0x2ac   : > { %v4293_v5 = vadd.f32 %v4275_v60, %v1605_v37 }
 0x2ad   : > { %v5093_v8 = vmax.f32 %v4278_v62, 0.0 }
 0x2ae   : > { %v3252_v38 = vpop.f32.mrb[30].mxu0  ;;  %v5094_v14 = vmax.f32 %v4293_v5, 0.0 }
 0x2af   : > { %v1615_v39 = vpop.f32.mrb[31].mxu0  ;;  %v4296_v6 = vadd.f32 %v3252_v38, %v4275_v60  ;;  %v2130_v46 = vsel %vm1394_vm4, %v5093_v8, -inf }
 0x2b0   : > { %v4299_v7 = vadd.f32 %v4275_v60, %v1615_v39  ;;  %v2129_v22 = vsel %vm1394_vm4, %v5094_v14, -inf }
 0x2b1   : > { %v5089_v24 = vmax.f32 %v4296_v6, 0.0 }
 0x2b2   : > { %v3255_v40 = vpop.f32.mrb[32].mxu0  ;;  %v5090_v30 = vmax.f32 %v4299_v7, 0.0 }
 0x2b3   : > { %v1625_v41 = vpop.f32.mrb[33].mxu0  ;;  %v4281_v63 = vadd.f32 %v3255_v40, %v4275_v60  ;;  %v2132_v34 = vsel %vm1394_vm4, %v5089_v24, -inf }
 0x2b4   : > { %v4284_v0 = vadd.f32 %v4275_v60, %v1625_v41  ;;  %v2131_v35 = vsel %vm1394_vm4, %v5090_v30, -inf }
 0x2b5   : > { %v5087_v9 = vmax.f32 %v4281_v63, 0.0 }
 0x2b6   : > { %v3258_v42 = vpop.f32.mrb[34].mxu0  ;;  %v5088_v10 = vmax.f32 %v4284_v0, 0.0 }
 0x2b7   : > { %v1635_v48 = vpop.f32.mrb[35].mxu0  ;;  %v4287_v1 = vadd.f32 %v3258_v42, %v4275_v60  ;;  %v2135_v19 = vsel %vm1394_vm4, %v5087_v9, -inf }
 0x2b8   : > { %v4290_v3 = vadd.f32 %v4275_v60, %v1635_v48  ;;  %v2133_v31 = vsel %vm1394_vm4, %v5088_v10, -inf  ;;  %v2136_v51 = vmax.f32 %v2130_v46, %v2135_v19 }
 0x2b9   : > { %v5095_v11 = vmax.f32 %v4287_v1, 0.0  ;;  %v2134_v43 = vmax.f32 %v2129_v22, %v2133_v31 }
 0x2ba   : > { %v3261_v49 = vpop.f32.mrb[36].mxu0  ;;  %v5096_v55 = vmax.f32 %v4290_v3, 0.0 }
 0x2bb   : > { %v1645_v53 = vpop.f32.mrb[37].mxu0  ;;  %v4307_v17 = vadd.f32 %v3261_v49, %v4275_v60  ;;  %v2139_v20 = vsel %vm1394_vm4, %v5095_v11, -inf }
 0x2bc   : > { %v4310_v28 = vadd.f32 %v4275_v60, %v1645_v53  ;;  %v2137_v45 = vsel %vm1394_vm4, %v5096_v55, -inf  ;;  %v2140_v50 = vmax.f32 %v2132_v34, %v2139_v20 }
 0x2bd   : > { %v5085_v13 = vmax.f32 %v4307_v17, 0.0  ;;  %v2138_v47 = vmax.f32 %v2131_v35, %v2137_v45 }
 0x2be   : > { %v3264_v54 = vpop.f32.mrb[38].mxu0  ;;  %v5086_v32 = vmax.f32 %v4310_v28, 0.0 }
 0x2bf   : > { %v1655_v56 = vpop.f32.mrb[39].mxu0  ;;  %v4314_v15 = vadd.f32 %v3264_v54, %v4275_v60  ;;  %v2143_v36 = vsel %vm1394_vm4, %v5085_v13, -inf }
 0x2c0   : > { %v4317_v18 = vadd.f32 %v4275_v60, %v1655_v56  ;;  %v2141_v37 = vsel %vm1394_vm4, %v5086_v32, -inf }
 0x2c1   : > { %v5083_v33 = vmax.f32 %v4314_v15, 0.0 }
 0x2c2   : > { %v3267_v57 = vpop.f32.mrb[40].mxu0  ;;  %v5084_v26 = vmax.f32 %v4317_v18, 0.0 }
 0x2c3   : > { %v1665_v58 = vpop.f32.mrb[41].mxu0  ;;  %v4339_v16 = vadd.f32 %v3267_v57, %v4275_v60  ;;  %v2147_v41 = vsel %vm1394_vm4, %v5083_v33, -inf }
 0x2c4   : > { %v4347_v12 = vadd.f32 %v4275_v60, %v1665_v58  ;;  %v2145_v42 = vsel %vm1394_vm4, %v5084_v26, -inf  ;;  %v2144_v58 = vmax.f32 %v2136_v51, %v2143_v36  ;;  %v2148_v46 = vmax.f32 %v2140_v50, %v2147_v41 }
 0x2c5   : > { %5127 = vst [vmem:[#allocation8_spill] sm:$0xff] %v4339_v16  ;;  %v5081_v38 = vmax.f32 %v4339_v16, 0.0  ;;  %v2146_v19 = vmax.f32 %v2138_v47, %v2145_v42 }
 0x2c6   : > { %v3270_v59 = vpop.f32.mrb[42].mxu0  ;;  %v5082_v48 = vmax.f32 %v4347_v12, 0.0 }
 0x2c7   : > { %v1675_v61 = vpop.f32.mrb[43].mxu0  ;;  %v4356_v23 = vadd.f32 %v3270_v59, %v4275_v60  ;;  %v2142_v59 = vmax.f32 %v2134_v43, %v2141_v37 }
 0x2c8   : > { %v4359_v44 = vadd.f32 %v4275_v60, %v1675_v61 }
 0x2c9   : > { %5128 = vst [vmem:[#allocation9_spill] sm:$0xff] %v4356_v23  ;;  %v5079_v53 = vmax.f32 %v4356_v23, 0.0 }
 0x2ca   : > { %v3273_v2 = vpop.f32.mrb[44].mxu0  ;;  %5129 = vst [vmem:[#allocation10_spill] sm:$0xff] %v4359_v44  ;;  %v5080_v54 = vmax.f32 %v4359_v44, 0.0 }
 0x2cb   : > { %v1685_v4 = vpop.f32.mrb[45].mxu0  ;;  %v4369_v39 = vadd.f32 %v3273_v2, %v4275_v60  ;;  %v2155_v22 = vsel %vm1394_vm4, %v5079_v53, -inf }
 0x2cc   : > { %v4379_v49 = vadd.f32 %v4275_v60, %v1685_v4  ;;  %v2151_v4 = vsel %vm1394_vm4, %v5081_v38, -inf  ;;  %v2153_v34 = vsel %vm1394_vm4, %v5080_v54, -inf }
 0x2cd   : > { %v5097_v31 = vmax.f32 %v4369_v39, 0.0  ;;  %v2152_v36 = vmax.f32 %v2144_v58, %v2151_v4  ;;  %v2156_v58 = vmax.f32 %v2148_v46, %v2155_v22 }
 0x2ce   : > { %v3276_v27 = vpop.f32.mrb[46].mxu0 }
 0x2cf   : > { %v1695_v29 = vpop.f32.mrb[47].mxu0  ;;  %v4384_v56 = vadd.f32 %v3276_v27, %v4275_v60  ;;  %v2149_v27 = vsel %vm1394_vm4, %v5082_v48, -inf  ;;  %v2159_v41 = vsel %vm1394_vm4, %v5097_v31, -inf }
 0x2d0   : > { %v4387_v57 = vadd.f32 %v4275_v60, %v1695_v29  ;;  %v5098_v29 = vmax.f32 %v4379_v49, 0.0  ;;  %v2150_v37 = vmax.f32 %v2142_v59, %v2149_v27  ;;  %v2154_v59 = vmax.f32 %v2146_v19, %v2153_v34 }
 0x2d1   : > { %v5091_v35 = vmax.f32 %v4384_v56, 0.0  ;;  %v2160_v19 = vmax.f32 %v2152_v36, %v2159_v41 }
 0x2d2   : > { %v3279_v21 = vpop.f32.mrb[48].mxu0  ;;  %v5092_v51 = vmax.f32 %v4387_v57, 0.0 }
 0x2d3   : > { %v1705_v25 = vpop.f32.mrb[49].mxu0  ;;  %v4390_v61 = vadd.f32 %v3279_v21, %v4275_v60  ;;  %v2163_v4 = vsel %vm1394_vm4, %v5091_v35, -inf }
 0x2d4   : > { %v4401_v45 = vadd.f32 %v4275_v60, %v1705_v25  ;;  %v2161_v27 = vsel %vm1394_vm4, %v5092_v51, -inf  ;;  %v2164_v36 = vmax.f32 %v2156_v58, %v2163_v4 }
 0x2d5   : > { %v5110_v43 = vmax.f32 %v4390_v61, 0.0 }
 0x2d6   : > { %v3282_v52 = vpop.f32.mrb[50].mxu0 }
 0x2d7   : > { %v1715_v40 = vpop.f32.mrb[51].mxu0  ;;  %v4404_v21 = vadd.f32 %v3282_v52, %v4275_v60 }
 0x2d8   : > { %v4416_v25 = vadd.f32 %v4275_v60, %v1715_v40  ;;  %v2157_v40 = vsel %vm1394_vm4, %v5098_v29, -inf }
 0x2d9   : > { %v2158_v22 = vmax.f32 %v2150_v37, %v2157_v40  ;;  %v2162_v37 = vmax.f32 %v2154_v59, %v2161_v27 }
 0x2da   : > { %v3285_v2 = vpop.f32.mrb[52].mxu0  ;;  %v5107_v38 = vmax.f32 %v4416_v25, 0.0  ;;  %v5146_v44 = vmax.f32 %v4416_v25, 0.0 }
 0x2db   : > { %v1725_v20 = vpop.f32.mrb[53].mxu0  ;;  %v4419_v50 = vadd.f32 %v3285_v2, %v4275_v60  ;;  %v5109_v2 = vmax.f32 %v4401_v45, 0.0 }
 0x2dc   : > { %v4422_v47 = vadd.f32 %v4275_v60, %v1725_v20  ;;  %v5108_v20 = vmax.f32 %v4404_v21, 0.0 }
 0x2dd   : > { %v5106_v48 = vmax.f32 %v4419_v50, 0.0  ;;  %v2165_v13 = vsel %vm1394_vm4, %v5109_v2, -inf }
 0x2de   : > { %v3288_v52 = vpop.f32.mrb[54].mxu0  ;;  %v2171_v32 = vsel %vm1394_vm4, %v5108_v20, -inf  ;;  %v2166_v58 = vmax.f32 %v2158_v22, %v2165_v13  ;;  %v2128_v20 = vld [vmem:[#allocation2] sm:$0x1] }
 0x2df   : > { %v4428_v42 = vadd.f32 %v3288_v52, %v4275_v60  ;;  %v1735_v53 = vpop.f32.mrb[55].mxu0  ;;  %v2167_v52 = vsel %vm1394_vm4, %v5110_v43, -inf  ;;  %v2175_v24 = vsel %vm1394_vm4, %v5106_v48, -inf  ;;  %v2172_v59 = vmax.f32 %v2164_v36, %v2171_v32 }
 0x2e0   : > { %v4436_v54 = vadd.f32 %v4275_v60, %v1735_v53  ;;  %v5105_v53 = vmax.f32 %v4422_v47, 0.0  ;;  %v2168_v41 = vmax.f32 %v2160_v19, %v2167_v52  ;;  %v2204_v48 = vlaneseq }
 0x2e1   : > { %v5104_v34 = vmax.f32 %v4428_v42, 0.0  ;;  %v5149_v25 = vmax.f32 %v4428_v42, 0.0 }
 0x2e2   : > { %v3291_v46 = vpop.f32.mrb[56].mxu0  ;;  %v5100_v9 = vmax.f32 %v4436_v54, 0.0  ;;  %v2173_v30 = vsel %vm1394_vm4, %v5105_v53, -inf  ;;  %v2176_v36 = vmax.f32 %v2168_v41, %v2175_v24 }
 0x2e3   : > { %v4452_v33 = vadd.f32 %v3291_v46, %v4275_v60  ;;  %v1745_v26 = vpop.f32.mrb[57].mxu0  ;;  %v2169_v46 = vsel %vm1394_vm4, %v5107_v38, -inf  ;;  %v2179_v4 = vsel %vm1394_vm4, %v5104_v34, -inf  ;;  %v4519_v38 = vshrl.u32 %v2204_v48, 7 }
 0x2e4   : > { %v4462_v10 = vadd.f32 %v4275_v60, %v1745_v26  ;;  %v2177_v19 = vsel %vm1394_vm4, %v5100_v9, -inf  ;;  %v2170_v22 = vmax.f32 %v2162_v37, %v2169_v46  ;;  %v2180_v14 = vmax.f32 %v2172_v59, %v2179_v4 }
 0x2e5   : > { %v5099_v40 = vmax.f32 %v4452_v33, 0.0  ;;  %v3622_v46 = vmov 0   ;;  %5138 = vst [vmem:[#allocation19_spill] sm:$0xff] %v4519_v38  ;;  %v4522_v2 = vsub.s32 0, %v4519_v38 }
 0x2e6   : > { %v5103_v26 = vmax.f32 %v4462_v10, 0.0  ;;  %v3294_v35 = vpop.f32.mrb[58].mxu0  ;;  %v2178_v55 = vmax.f32 %v2170_v22, %v2177_v19  ;;  %3424 = vset.pattern.permute.xlu1 %v3622_v46  ;;  %3505 = vset.pattern.permute.xlu0 %v3622_v46 }
 0x2e7   : > { %v4479_v27 = vadd.f32 %v3294_v35, %v4275_v60  ;;  %v1755_v52 = vpop.f32.mrb[59].mxu0  ;;  %v2183_v51 = vsel %vm1394_vm4, %v5099_v40, -inf  ;;  %v2174_v35 = vmax.f32 %v2166_v58, %v2173_v30  ;;  %5139 = vst [vmem:[#allocation20_spill] sm:$0xff] %v4522_v2 }
 0x2e8   : > { %v2181_v13 = vsel %vm1394_vm4, %v5103_v26, -inf  ;;  %v4491_v32 = vadd.f32 %v4275_v60, %v1755_v52  ;;  %v2184_v31 = vmax.f32 %v2176_v36, %v2183_v51 }
 0x2e9   : > { %v5102_v8 = vmax.f32 %v4479_v27, 0.0  ;;  %v2182_v29 = vmax.f32 %v2174_v35, %v2181_v13  ;;  %v3305_v58 = vpop.f32.mrb[36].mxu1 }
 0x2ea   : > { %v5101_v11 = vmax.f32 %v4491_v32, 0.0  ;;  %v1937_v51 = vpop.f32.mrb[37].mxu1 }
 0x2eb   : > { %v2187_v40 = vsel %vm1394_vm4, %v5102_v8, -inf  ;;  %v2189_v24 = vmax.f32 %v2182_v29, %v2184_v31 }
 0x2ec   : > { %v2188_v9 = vmax.f32 %v2180_v14, %v2187_v40  ;;  %v2185_v60 = vsel %vm1394_vm4, %v5101_v11, -inf }
 0x2ed   : > { %v2186_v37 = vmax.f32 %v2178_v55, %v2185_v60  ;;  %v3308_v59 = vpop.f32.mrb[38].mxu1 }
 0x2ee   : > { %v1947_v4 = vpop.f32.mrb[39].mxu1 }
 0x2ef   : > { %v2190_v30 = vmax.f32 %v2186_v37, %v2188_v9 }
 0x2f1   : > { %v2191_v41 = vmax.f32 %v2189_v24, %v2190_v30  ;;  %v3311_v52 = vpop.f32.mrb[40].mxu1 }
 0x2f2   : > { %v4501_v19 = vpop.f32.mrb[41].mxu1 }
 0x2f3   : > { %2192 = vmax.xlane.f32.xlu0 %v2191_v41 }
 0x2f5   : > { %v3314_v14 = vpop.f32.mrb[42].mxu1 }
 0x2f6   : > { %v1967_v40 = vpop.f32.mrb[43].mxu1 }
 0x2f9   : > { %v4503_v13 = vpop.f32.mrb[44].mxu1 }
 0x2fa   : > { %5130 = vst [vmem:[#allocation11_spill] sm:$0xff] %v4503_v13  ;;  %v4505_v22 = vpop.f32.mrb[45].mxu1 }
 0x2fb   : > { %5131 = vst [vmem:[#allocation12_spill] sm:$0xff] %v4505_v22 }
 0x2fd   : > { %v4507_v55 = vpop.f32.mrb[46].mxu1 }
 0x2fe   : > { %5132 = vst [vmem:[#allocation13_spill] sm:$0xff] %v4507_v55  ;;  %v4509_v9 = vpop.f32.mrb[47].mxu1 }
 0x2ff   : > { %5133 = vst [vmem:[#allocation14_spill] sm:$0xff] %v4509_v9 }
 0x301   : > { %v4511_v31 = vpop.f32.mrb[48].mxu1 }
 0x302   : > { %5134 = vst [vmem:[#allocation15_spill] sm:$0xff] %v4511_v31  ;;  %v4513_v29 = vpop.f32.mrb[49].mxu1 }
 0x303   : > { %5135 = vst [vmem:[#allocation16_spill] sm:$0xff] %v4513_v29 }
 0x305   : > { %v4515_v36 = vpop.f32.mrb[50].mxu1 }
 0x306   : > { %5136 = vst [vmem:[#allocation17_spill] sm:$0xff] %v4515_v36  ;;  %v4517_v35 = vpop.f32.mrb[51].mxu1 }
 0x307   : > { %5137 = vst [vmem:[#allocation18_spill] sm:$0xff] %v4517_v35 }
 0x309   : > { %v3329_v60 = vpop.f32.mrb[52].mxu1 }
 0x30a   : > { %v2017_v37 = vpop.f32.mrb[53].mxu1 }
 0x30d   : > { %v3332_v24 = vpop.f32.mrb[54].mxu1 }
 0x30e   : > { %v2027_v30 = vpop.f32.mrb[55].mxu1 }
 0x380   : > { %v2193_v41 = vpop.xlane.xlu0 %2192 }
 0x381   : > { %v2194_v46 = vrot.slane %v2193_v41, 4 }
 0x383   : > { %v2195_v11 = vmax.f32 %v2193_v41, %v2194_v46  ;;  %v3335_v46 = vpop.f32.mrb[56].mxu1 }
 0x385   : > { %v2196_v8 = vrot.slane %v2195_v11, 2 }
 0x387   : > { %v2197_v26 = vmax.f32 %v2195_v11, %v2196_v8  ;;  %v2037_v8 = vpop.f32.mrb[57].mxu1 }
 0x388   : > { %v3338_v11 = vpop.f32.mrb[58].mxu1 }
 0x389   : > { %v2198_v34 = vrot.slane %v2197_v26, 1 }
 0x38b   : > { %v2199_v53 = vmax.f32 %v2197_v26, %v2198_v34 }
 0x38d   : > { %3377 = vpush %v2199_v53  ;;  %v2047_v53 = vpop.f32.mrb[59].mxu1 }
 0x38e   : > { %v3341_v34 = vpop.f32.mrb[60].mxu1 }
 0x38f   : > { %v2057_v48 = vpop.f32.mrb[61].mxu1 }
 0x390   : > { %v3344_v26 = vpop.f32.mrb[62].mxu1 }
 0x391   : > { %v2067_v31 = vpop.f32.mrb[63].mxu1 }
 0x392   : > { %v4525_v29 = vpop.f32.mrb[64].mxu1 }
 0x393   : > { %v4527_v38 = vpop.f32.mrb[65].mxu1 }
 0x394   : > { %v4529_v55 = vpop.f32.mrb[66].mxu1 }
 0x3be   : > { %s3378_s27 = spop %3377 }
 0x3bf   : > { %v2201_v43 = vstv %s3378_s27 }
 0x3c0   : > { %v2202_v36 = vmax.f32 %v2128_v20, %v2201_v43  ;;  %v4531_v43 = vpop.f32.mrb[67].mxu1 }
 0x3c2   : > { %v2617_v35 = vsub.f32 %v2128_v20, %v2202_v36  ;;  %2642 = vst.msk [vmem:[#allocation2] sm:$0x1] %vm2641_vm6, %v2202_v36  ;;  %v2207_v41 = vrot.slane %v2202_v36, %v4522_v2  ;;  %v4536_v20 = vld [vmem:[%s5075_s11] ss:$0 sm:$0xff] }
 0x3c3   : > { %v4539_v36 = vadd.f32 %v3305_v58, %v4536_v20  ;;  %v4545_v2 = vadd.f32 %v3308_v59, %v4536_v20  ;;  %v4548_v9 = vadd.f32 %v4536_v20, %v1947_v4  ;;  %v4551_v13 = vadd.f32 %v3311_v52, %v4536_v20 }
 0x3c4   : > { %2209 = vperm.xlu1 %3424, %v2207_v41   ;;  %v4542_v41 = vadd.f32 %v4536_v20, %v1937_v51  ;;  %v4554_v22 = vadd.f32 %v3314_v14, %v4536_v20  ;;  %v4557_v23 = vadd.f32 %v4536_v20, %v1967_v40  ;;  %v4560_v58 = vadd.f32 %v3329_v60, %v4536_v20 }
 0x3c5   : > { %5140 = vst [vmem:[#allocation21_spill] sm:$0xff] %v4545_v2  ;;  %5141 = vst [vmem:[#allocation22_spill] sm:$0xff] %v4548_v9  ;;  %v4563_v51 = vadd.f32 %v4536_v20, %v2017_v37  ;;  %v2618_v59 = vmul.f32 1.442695, %v2617_v35  ;;  %v4567_v4 = vadd.f32 %v3332_v24, %v4536_v20  ;;  %v4570_v52 = vadd.f32 %v3335_v46, %v4536_v20 }
 0x3c6   : > { %5142 = vst [vmem:[#allocation23_spill] sm:$0xff] %v4551_v13  ;;  %v4575_v16 = vadd.f32 %v4536_v20, %v2037_v8  ;;  %v4578_v60 = vadd.f32 %v3338_v11, %v4536_v20  ;;  %v4584_v24 = vadd.f32 %v4536_v20, %v4501_v19  ;;  %v4591_v14 = vadd.f32 %v4536_v20, %v2047_v53 }
 0x3c7   : > { %3506 = vpow2.f32 %v2618_v59  ;;  %v4595_v37 = vadd.f32 %v4536_v20, %v2027_v30  ;;  %v4603_v40 = vadd.f32 %v3341_v34, %v4536_v20  ;;  %v4606_v53 = vadd.f32 %v4536_v20, %v2057_v48 }
 0x3c8   : > { %v5143_v59 = vmax.f32 %v4390_v61, 0.0  ;;  %v5144_v30 = vmax.f32 %v4401_v45, 0.0  ;;  %v5145_v19 = vmax.f32 %v4404_v21, 0.0  ;;  %v5147_v48 = vmax.f32 %v4419_v50, 0.0 }
 0x3c9   : > { %v5148_v61 = vmax.f32 %v4422_v47, 0.0  ;;  %v4628_v45 = vadd.f32 %v3344_v26, %v4536_v20  ;;  %v2121_v13 = vmax.f32 %v4603_v40, 0.0  ;;  %v4635_v50 = vadd.f32 %v4536_v20, %v2067_v31 }
 0x3ca   : > { %v5150_v47 = vmax.f32 %v4436_v54, 0.0  ;;  %v5152_v31 = vmax.f32 %v4462_v10, 0.0  ;;  %v4650_v54 = vadd.f32 %v4525_v29, %v4536_v20  ;;  %v4663_v29 = vadd.f32 %v4536_v20, %v4527_v38 }
 0x3cb   : > { %v4677_v38 = vadd.f32 %v4536_v20, %v4531_v43  ;;  %v5159_v43 = vmax.f32 %v4293_v5, 0.0  ;;  %v5171_v40 = vmax.f32 %v4310_v28, 0.0 }
 0x3d1   : > { %v4659_v10 = vpop.eup %3506 }
 0x443   : > { %v4598_v35 = vpop.permute.xlu1 %2209 }
 0x444   : > { %v2233_v11 = vsub.f32 %v5143_v59, %v4598_v35  ;;  %v2232_v8 = vsub.f32 %v5144_v30, %v4598_v35  ;;  %v2235_v46 = vsub.f32 %v5145_v19, %v4598_v35  ;;  %v2234_v34 = vsub.f32 %v5146_v44, %v4598_v35 }
 0x445   : > { %v2237_v2 = vsub.f32 %v5147_v48, %v4598_v35  ;;  %v2236_v59 = vsub.f32 %v5148_v61, %v4598_v35  ;;  %v2239_v44 = vsub.f32 %v5149_v25, %v4598_v35  ;;  %v2238_v48 = vsub.f32 %v5150_v47, %v4598_v35 }
 0x446   : > { %v2286_v30 = vmul.f32 1.442695, %v2233_v11  ;;  %v2284_v21 = vmul.f32 1.442695, %v2232_v8  ;;  %v2290_v19 = vmul.f32 1.442695, %v2235_v46  ;;  %v2240_v61 = vsub.f32 %v5152_v31, %v4598_v35 }
 0x447   : > { %v2288_v9 = vmul.f32 1.442695, %v2234_v34  ;;  %v2294_v26 = vmul.f32 1.442695, %v2237_v2  ;;  %v2120_v11 = vmax.f32 %v4606_v53, 0.0  ;;  %v5151_v46 = vmax.f32 %v4452_v33, 0.0 }
 0x448   : > { %3508 = vpow2.f32 %v2286_v30  ;;  %v2292_v42 = vmul.f32 1.442695, %v2236_v59  ;;  %v2123_v34 = vmax.f32 %v4628_v45, 0.0  ;;  %v2298_v25 = vmul.f32 1.442695, %v2239_v44 }
 0x449   : > { %v2241_v8 = vsub.f32 %v5151_v46, %v4598_v35  ;;  %3510 = vpow2.f32 %v2284_v21  ;;  %v5153_v2 = vmax.f32 %v4479_v27, 0.0  ;;  %v2122_v33 = vmax.f32 %v4635_v50, 0.0 }
 0x44a   : > { %3512 = vpow2.f32 %v2290_v19  ;;  %v2296_v59 = vmul.f32 1.442695, %v2238_v48  ;;  %v5154_v21 = vmax.f32 %v4491_v32, 0.0  ;;  %v5155_v27 = vmax.f32 %v4379_v49, 0.0 }
 0x44b   : > { %v2243_v30 = vsub.f32 %v5153_v2, %v4598_v35  ;;  %3514 = vpow2.f32 %v2288_v9  ;;  %v2302_v19 = vmul.f32 1.442695, %v2241_v8  ;;  %v2300_v9 = vmul.f32 1.442695, %v2240_v61 }
 0x44c   : > { %v2242_v47 = vsub.f32 %v5154_v21, %v4598_v35  ;;  %3516 = vpow2.f32 %v2294_v26  ;;  %v2228_v44 = vsub.f32 %v5155_v27, %v4598_v35  ;;  %v4670_v48 = vadd.f32 %v4529_v55, %v4536_v20 }
 0x44d   : > { %3518 = vpow2.f32 %v2292_v42  ;;  %v5156_v32 = vmax.f32 %v4369_v39, 0.0  ;;  %v2306_v26 = vmul.f32 1.442695, %v2243_v30  ;;  %v5157_v49 = vmax.f32 %v4290_v3, 0.0 }
 0x44e   : > { %3520 = vpow2.f32 %v2298_v25  ;;  %v2125_v42 = vmax.f32 %v4650_v54, 0.0  ;;  %v2304_v31 = vmul.f32 1.442695, %v2242_v47  ;;  %v5158_v55 = vmax.f32 %v4287_v1, 0.0 }
 0x44f   : > { %v2229_v46 = vsub.f32 %v5156_v32, %v4598_v35  ;;  %v2218_v8 = vsub.f32 %v5157_v49, %v4598_v35  ;;  %3522 = vpow2.f32 %v2296_v59  ;;  %v2124_v39 = vmax.f32 %v4663_v29, 0.0 }
 0x450   : > { %v2219_v61 = vsub.f32 %v5158_v55, %v4598_v35  ;;  %3524 = vpow2.f32 %v2302_v19  ;;  %v2276_v25 = vmul.f32 1.442695, %v2228_v44  ;;  %v2212_v2 = vsub.f32 %v5159_v43, %v4598_v35 }
 0x451   : > { %3526 = vpow2.f32 %v2300_v9  ;;  %v2127_v3 = vmax.f32 %v4670_v48, 0.0  ;;  %v2278_v30 = vmul.f32 1.442695, %v2229_v46  ;;  %v5160_v54 = vmax.f32 %v4278_v62, 0.0 }
 0x452   : > { %v4694_v21 = vpop.eup %3508  ;;  %3528 = vpow2.f32 %v2306_v26  ;;  %v2126_v1 = vmax.f32 %v4677_v38, 0.0  ;;  %v2256_v47 = vmul.f32 1.442695, %v2218_v8  ;;  %v5161_v19 = vmax.f32 %v4387_v57, 0.0 }
 0x453   : > { %v2213_v59 = vsub.f32 %v5160_v54, %v4598_v35  ;;  %v4700_v5 = vpop.eup %3510  ;;  %v5162_v27 = vmax.f32 %v4570_v52, 0.0  ;;  %3530 = vpow2.f32 %v2304_v31  ;;  %v2258_v62 = vmul.f32 1.442695, %v2219_v61 }
 0x454   : > { %v2230_v29 = vsub.f32 %v5161_v19, %v4598_v35  ;;  %v5163_v9 = vmax.f32 %v4384_v56, 0.0  ;;  %v4710_v32 = vpop.eup %3512  ;;  %v5164_v46 = vmax.f32 %v4575_v16, 0.0  ;;  %3532 = vpow2.f32 %v2276_v25 }
 0x455   : > { %v4705_v44 = vmul.f32 %v4694_v21, %v5162_v27  ;;  %v2244_v26 = vmul.f32 1.442695, %v2212_v2  ;;  %v5165_v52 = vmax.f32 %v4299_v7, 0.0  ;;  %v4720_v49 = vpop.eup %3514  ;;  %v5166_v8 = vmax.f32 %v4578_v60, 0.0 }
 0x456   : > { %v2231_v48 = vsub.f32 %v5163_v9, %v4598_v35  ;;  %v4715_v57 = vmul.f32 %v4700_v5, %v5164_v46  ;;  %3534 = vpow2.f32 %v2278_v30  ;;  %v2246_v31 = vmul.f32 1.442695, %v2213_v59  ;;  %v4730_v61 = vpop.eup %3516 }
 0x457   : > { %v2214_v38 = vsub.f32 %v5165_v52, %v4598_v35  ;;  %v4725_v56 = vmul.f32 %v4710_v32, %v5166_v8  ;;  %v5167_v16 = vmax.f32 %v4296_v6, 0.0  ;;  %v5168_v25 = vmax.f32 %v4591_v14, 0.0  ;;  %v4740_v54 = vpop.eup %3518 }
 0x458   : > { %3536 = vpow2.f32 %v2256_v47  ;;  %v2280_v43 = vmul.f32 1.442695, %v2230_v29  ;;  %v5169_v60 = vmax.f32 %v4284_v0, 0.0  ;;  %v4745_v6 = vmul.f32 %v4730_v61, %v2121_v13  ;;  %v4750_v19 = vpop.eup %3520 }
 0x459   : > { %v2215_v55 = vsub.f32 %v5167_v16, %v4598_v35  ;;  %v4735_v7 = vmul.f32 %v4720_v49, %v5168_v25  ;;  %3538 = vpow2.f32 %v2258_v62  ;;  %v2282_v30 = vmul.f32 1.442695, %v2231_v48  ;;  %v4760_v29 = vpop.eup %3522 }
 0x45a   : > { %v2216_v2 = vsub.f32 %v5169_v60, %v4598_v35  ;;  %v5170_v14 = vmax.f32 %v4281_v63, 0.0  ;;  %v4755_v0 = vmul.f32 %v4740_v54, %v2120_v11  ;;  %3540 = vpow2.f32 %v2244_v26  ;;  %v4770_v62 = vpop.eup %3524 }
 0x45b   : > { %v2248_v47 = vmul.f32 1.442695, %v2214_v38  ;;  %v2220_v13 = vsub.f32 %v5171_v40, %v4598_v35  ;;  %v4765_v63 = vmul.f32 %v4750_v19, %v2123_v34  ;;  %3542 = vpow2.f32 %v2246_v31  ;;  %v4780_v48 = vpop.eup %3526 }
 0x45c   : > { %v2217_v59 = vsub.f32 %v5170_v14, %v4598_v35  ;;  %v2250_v27 = vmul.f32 1.442695, %v2215_v55  ;;  %v5172_v53 = vmax.f32 %v4307_v17, 0.0  ;;  %v4775_v28 = vmul.f32 %v4760_v29, %v2122_v33  ;;  %v4788_v52 = vpop.eup %3528 }
 0x45d   : > { %3544 = vpow2.f32 %v2280_v43  ;;  %v2252_v9 = vmul.f32 1.442695, %v2216_v2  ;;  %v5173_v45 = vmax.f32 %v4317_v18, 0.0  ;;  %v4783_v46 = vmul.f32 %v4770_v62, %v2125_v42  ;;  %v3531_v31 = vpop.eup %3530  ;;  %v5178_v2 = vld [vmem:[#allocation10_spill] sm:$0xff] }
 0x45e   : > { %v2221_v11 = vsub.f32 %v5172_v53, %v4598_v35  ;;  %3546 = vpow2.f32 %v2282_v30  ;;  %v2254_v17 = vmul.f32 1.442695, %v2217_v59  ;;  %v5174_v26 = vmax.f32 %v4314_v15, 0.0  ;;  %v5176_v15 = vld [vmem:[#allocation8_spill] sm:$0xff]  ;;  %v3533_v43 = vpop.eup %3532 }
 0x45f   : > { %v2222_v34 = vsub.f32 %v5173_v45, %v4598_v35  ;;  %v4791_v33 = vmul.f32 %v4780_v48, %v2124_v39  ;;  %3548 = vpow2.f32 %v2248_v47  ;;  %v2260_v38 = vmul.f32 1.442695, %v2220_v13 }
 0x460   : > { %v2223_v50 = vsub.f32 %v5174_v26, %v4598_v35  ;;  %v5175_v18 = vmax.f32 %v4347_v12, 0.0  ;;  %v4797_v42 = vmul.f32 %v4788_v52, %v2127_v3  ;;  %3550 = vpow2.f32 %v2250_v27  ;;  %v3535_v14 = vpop.eup %3534  ;;  %v5180_v3 = vld [vmem:[#allocation9_spill] sm:$0xff] }
 0x461   : > { %v2262_v16 = vmul.f32 1.442695, %v2221_v11  ;;  %v5177_v55 = vmax.f32 %v5176_v15, 0.0  ;;  %v4802_v60 = vmul.f32 %v3531_v31, %v2126_v1  ;;  %3552 = vpow2.f32 %v2252_v9 }
 0x462   : > { %v2224_v8 = vsub.f32 %v5175_v18, %v4598_v35  ;;  %v2264_v39 = vmul.f32 1.442695, %v2222_v34  ;;  %v5179_v30 = vmax.f32 %v5178_v2, 0.0  ;;  %3554 = vpow2.f32 %v2254_v17  ;;  %v3537_v53 = vpop.eup %3536  ;;  %v5188_v2 = vld [vmem:[#allocation11_spill] sm:$0xff] }
 0x463   : > { %v2225_v25 = vsub.f32 %v5177_v55, %v4598_v35  ;;  %v2266_v59 = vmul.f32 1.442695, %v2223_v50  ;;  %v5181_v47 = vmax.f32 %v5180_v3, 0.0  ;;  %v5182_v13 = vmax.f32 %v4563_v51, 0.0  ;;  %v3539_v34 = vpop.eup %3538  ;;  %v5186_v55 = vld [vmem:[#allocation12_spill] sm:$0xff]  ;;  %v5190_v3 = vld [vmem:[#allocation14_spill] sm:$0xff] }
 0x464   : > { %v2226_v12 = vsub.f32 %v5179_v30, %v4598_v35  ;;  %v3425_v1 = vpack.i.bf16 %v3535_v14, %v3533_v43  ;;  %3556 = vpow2.f32 %v2260_v38  ;;  %v2268_v11 = vmul.f32 1.442695, %v2224_v8  ;;  %v3541_v51 = vpop.eup %3540 }
 0x465   : > { %v2227_v40 = vsub.f32 %v5181_v47, %v4598_v35  ;;  %v4812_v27 = vmul.f32 %v3533_v43, %v5182_v13  ;;  %v5183_v9 = vmax.f32 %v4560_v58, 0.0  ;;  %v2114_v17 = vmax.f32 %v4595_v37, 0.0  ;;  %v3543_v15 = vpop.eup %3542  ;;  %v5191_v13 = vld [vmem:[#allocation13_spill] sm:$0xff] }
 0x466   : > { %3558 = vpow2.f32 %v2262_v16  ;;  %v2270_v26 = vmul.f32 1.442695, %v2225_v25  ;;  %v5184_v50 = vmax.f32 %v4557_v23, 0.0  ;;  %3426 = vrot.lane.b32.xlu1 %v3425_v1, %s3621_s17  ;;  %v3460_v18 = vpack.i.bf16 %v3539_v34, %v3537_v53 }
 0x467   : > { %v4816_v45 = vmul.f32 %v3535_v14, %v5183_v9  ;;  %3560 = vpow2.f32 %v2264_v39  ;;  %v2272_v38 = vmul.f32 1.442695, %v2226_v12  ;;  %v5185_v8 = vmax.f32 %v4554_v22, 0.0  ;;  %v3545_v43 = vpop.eup %3544 }
 0x468   : > { %v4821_v35 = vmul.f32 %v3537_v53, %v5184_v50  ;;  %v1978_v37 = vadd.f32 %v4536_v20, %v5186_v55  ;;  %3562 = vpow2.f32 %v2266_v59  ;;  %v2274_v16 = vmul.f32 1.442695, %v2227_v40  ;;  %3461 = vrot.lane.b32.xlu0 %v3460_v18, %s3621_s17  ;;  %v3547_v14 = vpop.eup %3546 }
 0x469   : > { %v4826_v58 = vmul.f32 %v3539_v34, %v5185_v8  ;;  %v5187_v23 = vmax.f32 %v4542_v41, 0.0  ;;  %v1983_v30 = vadd.f32 %v5188_v2, %v4536_v20  ;;  %v3430_v39 = vpack.i.bf16 %v3543_v15, %v3541_v51  ;;  %v3549_v40 = vpop.eup %3548  ;;  %v5193_v34 = vld [vmem:[#allocation16_spill] sm:$0xff]  ;;  %v5199_v2 = vld [vmem:[#allocation18_spill] sm:$0xff] }
 0x46a   : > { %3564 = vpow2.f32 %v2268_v11  ;;  %v5189_v22 = vmax.f32 %v4539_v36, 0.0  ;;  %v2100_v59 = vmax.f32 %v4584_v24, 0.0  ;;  %v1988_v41 = vadd.f32 %v4536_v20, %v5190_v3  ;;  %v3551_v24 = vpop.eup %3550 }
 0x46b   : > { %v4832_v25 = vmul.f32 %v3541_v51, %v5187_v23  ;;  %3566 = vpow2.f32 %v2270_v26  ;;  %v4844_v47 = vmul.f32 %v3545_v43, %v2114_v17  ;;  %v1993_v53 = vadd.f32 %v5191_v13, %v4536_v20  ;;  %3431 = vrot.lane.b32.xlu1 %v3430_v39, %s3621_s17  ;;  %v5194_v17 = vld [vmem:[#allocation22_spill] sm:$0xff]  ;;  %v3553_v18 = vpop.eup %3552 }
 0x46c   : > { %v4839_v12 = vmul.f32 %v3543_v15, %v5189_v22  ;;  %v3495_v1 = vpack.i.bf16 %v4788_v52, %v3531_v31  ;;  %3568 = vpow2.f32 %v2272_v38  ;;  %v5192_v36 = vmax.f32 %v4567_v4, 0.0  ;;  %v5196_v52 = vld [vmem:[#allocation15_spill] sm:$0xff]  ;;  %v5197_v38 = vld [vmem:[#allocation21_spill] sm:$0xff] }
 0x46d   : > { %v2104_v9 = vmax.f32 %v1978_v37, 0.0  ;;  %v1998_v26 = vadd.f32 %v4536_v20, %v5193_v34  ;;  %3570 = vpow2.f32 %v2274_v16  ;;  %v5195_v50 = vmax.f32 %v5194_v17, 0.0  ;;  %v3555_v37 = vpop.eup %3554 }
 0x46e   : > { %v4852_v11 = vmul.f32 %v3547_v14, %v5192_v36  ;;  %v2105_v8 = vmax.f32 %v1983_v30, 0.0  ;;  %v2003_v31 = vadd.f32 %v5196_v52, %v4536_v20  ;;  %3496 = vrot.lane.b32.xlu0 %v3495_v1, %s3621_s17  ;;  %v3435_v4 = vpack.i.bf16 %v3547_v14, %v3545_v43  ;;  %v3557_v22 = vpop.eup %3556  ;;  %v5200_v30 = vld [vmem:[#allocation17_spill] sm:$0xff]  ;;  %v5201_v36 = vld [vmem:[#allocation20_spill] sm:$0xff]  ;;  %v5202_v43 = vld [vmem:[#allocation23_spill] sm:$0xff] }
 0x46f   : > { %v4858_v51 = vmul.f32 %v3549_v40, %v5195_v50  ;;  %v5198_v15 = vmax.f32 %v5197_v38, 0.0  ;;  %v2106_v23 = vmax.f32 %v1988_v41, 0.0  ;;  %v2008_v16 = vadd.f32 %v4536_v20, %v5199_v2 }
 0x470   : > { %v4869_v39 = vmul.f32 %v3553_v18, %v2100_v59  ;;  %v2107_v3 = vmax.f32 %v1993_v53, 0.0  ;;  %v2013_v13 = vadd.f32 %v5200_v30, %v4536_v20  ;;  %v2624_v1 = vrot.slane %v4659_v10, %v5201_v36  ;;  %3436 = vrot.lane.b32.xlu1 %v3435_v4, %s3621_s17  ;;  %v3559_v41 = vpop.eup %3558 }
 0x471   : > { %v4865_v55 = vmul.f32 %v3551_v24, %v5198_v15  ;;  %v5203_v14 = vmax.f32 %v5202_v43, 0.0  ;;  %v2108_v17 = vmax.f32 %v1998_v26, 0.0  ;;  %v4880_v50 = vmul.f32 %v3557_v22, %v2104_v9  ;;  %v3561_v59 = vpop.eup %3560 }
 0x472   : > { %v2109_v52 = vmax.f32 %v2003_v31, 0.0  ;;  %2626 = vperm.xlu0 %3505, %v2624_v1   ;;  %v3440_v53 = vpack.i.bf16 %v3551_v24, %v3549_v40  ;;  %v4882_v38 = vmul.f32 %v3559_v41, %v2105_v8  ;;  %v3563_v20 = vpop.eup %3562  ;;  %v2110_v15 = vmax.f32 %v2008_v16, 0.0 }
 0x473   : > { %v4878_v34 = vmul.f32 %v3555_v37, %v5203_v14  ;;  %v4884_v2 = vmul.f32 %v3561_v59, %v2106_v23  ;;  %v2111_v4 = vmax.f32 %v2013_v13, 0.0  ;;  %v4887_v30 = vmul.f32 %v3563_v20, %v2107_v3 }
 0x474   : > { %v3565_v10 = vpop.eup %3564  ;;  %3441 = vrot.lane.b32.xlu1 %v3440_v53, %s3621_s17  ;;  %v3445_v31 = vpack.i.bf16 %v4694_v21, %v4700_v5  ;;  %v3450_v16 = vpack.i.bf16 %v3555_v37, %v3553_v18  ;;  %v3455_v3 = vpack.i.bf16 %v4710_v32, %v4720_v49  ;;  %v3465_v21 = vpack.i.bf16 %v4730_v61, %v4740_v54  ;;  %v2308_v32 = vld [vmem:[%s478_s0] sm:$0x3]  ;;  %s3624_s0 = smov (!%p2958_p9), 96  }
 0x475   : > { %v3567_v43 = vpop.eup %3566  ;;  %v4889_v26 = vmul.f32 %v3565_v10, %v2108_v17  ;;  %v3470_v5 = vpack.i.bf16 %v3559_v41, %v3557_v22  ;;  %v3475_v13 = vpack.i.bf16 %v4750_v19, %v4760_v29  ;;  %v3480_v18 = vpack.i.bf16 %v3563_v20, %v3561_v59  ;;  %v5204_v54 = vld [vmem:[#allocation19_spill] sm:$0xff] }
 0x476   : > { %v3569_v9 = vpop.eup %3568  ;;  %v4893_v40 = vmul.f32 %v3567_v43, %v2109_v52  ;;  %v3485_v49 = vpack.i.bf16 %v4770_v62, %v4780_v48  ;;  %v4920_v61 = vrot.slane %v2308_v32, %v5201_v36  ;;  %v2311_v19 = vadd.s32 8, %v5204_v54 }
 0x477   : > { %v3571_v24 = vpop.eup %3570  ;;  %v4895_v8 = vmul.f32 %v3569_v9, %v2110_v15  ;;  %v2326_v29 = vsub.s32 1, %v5204_v54  ;;  %v2315_v37 = vstv %s2941_s28  ;;  %v3490_v22 = vpack.i.bf16 %v3567_v43, %v3565_v10 }
 0x478   : > { %3446 = vrot.lane.b32.xlu1 %v3445_v31, %s3621_s17  ;;  %v4898_v23 = vmul.f32 %v3571_v24, %v2111_v4  ;;  %v2316_v1 = vadd.s32 %v2315_v37, %v5204_v54  ;;  %v2317_v14 = vadd.s32 %v2315_v37, %v2311_v19  ;;  %v2312_v17 = vadd.s32 16, %v5204_v54 }
 0x479   : > { %v2327_v41 = vrot.slane %v2308_v32, %v2326_v29  ;;  %v2313_v62 = vadd.s32 24, %v5204_v54  ;;  %v3500_v59 = vpack.i.bf16 %v3571_v24, %v3569_v9  ;;  %v3623_v52 = vmov 1.0|1.0  }
 0x47a   : > { %vm2328_vm7 = vcmp.eq.s32.totalorder %v2316_v1, %v4920_v61  ;;  %vm2330_vm9 = vcmp.eq.s32.totalorder %v2317_v14, %v4920_v61  ;;  %v4932_v48 = vadd.s32 %v2315_v37, %v2312_v17 }
 0x47b   : > { %vm2329_vm8 = vcmp.eq.s32.totalorder %v2316_v1, %v2327_v41  ;;  %vm2331_vm10 = vcmp.eq.s32.totalorder %v2317_v14, %v2327_v41  ;;  %v4934_v36 = vadd.s32 %v2315_v37, %v2313_v62  ;;  %vm4937_vm12 = vmpackc.low %vm2330_vm9, %vm2328_vm7 }
 0x47c   : > { %3451 = vrot.lane.b32.xlu1 %v3450_v16, %s3621_s17  ;;  %vm2950_vm11 = vmpackc.low %vm2331_vm10, %vm2329_vm8  ;;  %vm2333_vm13 = vcmp.eq.s32.totalorder %v4932_v48, %v2327_v41  ;;  %vm2332_vm0 = vcmp.eq.s32.totalorder %v4932_v48, %v4920_v61 }
 0x47d   : > { %2951 = vmatprep.mubr.msk.bf16.mxu0 %vm2950_vm11, %v3623_v52  ;;  %vm2335_vm14 = vcmp.eq.s32.totalorder %v4934_v36, %v2327_v41  ;;  %vm2334_vm1 = vcmp.eq.s32.totalorder %v4934_v36, %v4920_v61  ;;  %v2616_v36 = vld [vmem:[#allocation3 + $0x18] sm:$0xff] }
 0x47e   : > { %vm4944_vm15 = vmpackc.low %vm2335_vm14, %vm2333_vm13 }
 0x47f   : > { %vm2956_vm2 = vmpackc.low %vm2334_vm1, %vm2332_vm0 }
 0x480   : > { %3456 = vrot.lane.b32.xlu1 %v3455_v3, %s3621_s17 }
 0x484   : > { %3466 = vrot.lane.b32.xlu1 %v3465_v21, %s3621_s17 }
 0x488   : > { %3471 = vrot.lane.b32.xlu1 %v3470_v5, %s3621_s17 }
 0x48c   : > { %3476 = vrot.lane.b32.xlu1 %v3475_v13, %s3621_s17 }
 0x490   : > { %3481 = vrot.lane.b32.xlu1 %v3480_v18, %s3621_s17 }
 0x494   : > { %3486 = vrot.lane.b32.xlu1 %v3485_v49, %s3621_s17 }
 0x498   : > { %3491 = vrot.lane.b32.xlu1 %v3490_v22, %s3621_s17 }
 0x49c   : > { %3501 = vrot.lane.b32.xlu1 %v3500_v59, %s3621_s17 }
 0x4d8   : > { %v3427_v15 = vpop.permute.xlu1 %3426 }
 0x4d9   : > { %v3429_v10 = vunpack.i.h.bf16 %v3427_v15  ;;  %v3428_v4 = vunpack.i.l.bf16 %v3427_v15 }
 0x4da   : > { %v3462_v43 = vpop.permute.xlu0 %3461 }
 0x4db   : > { %v3464_v9 = vunpack.i.h.bf16 %v3462_v43  ;;  %v3463_v31 = vunpack.i.l.bf16 %v3462_v43  ;;  %v2532_v24 = vsel %vm1394_vm4, %v4812_v27, %v3428_v4  ;;  %v2533_v16 = vsel %vm1394_vm4, %v4816_v45, %v3429_v10 }
 0x4dc   : > { %v2556_v21 = vpack.c.bf16 %v2533_v16, %v2532_v24 }
 0x4dd   : > { %v3432_v3 = vpop.permute.xlu1 %3431  ;;  %v2522_v5 = vsel %vm1394_vm4, %v4821_v35, %v3463_v31  ;;  %v2523_v13 = vsel %vm1394_vm4, %v4826_v58, %v3464_v9 }
 0x4de   : > { %v3434_v18 = vunpack.i.h.bf16 %v3432_v3  ;;  %v3433_v32 = vunpack.i.l.bf16 %v3432_v3  ;;  %v2551_v49 = vpack.c.bf16 %v2523_v13, %v2522_v5  ;;  %3103 = vmatprep.subr.bf16.mxu0 %v2556_v21 }
 0x4e0   : > { %v3497_v54 = vpop.permute.xlu0 %3496  ;;  %v2516_v27 = vsel %vm1394_vm4, %v4832_v25, %v3433_v32  ;;  %v2517_v45 = vsel %vm1394_vm4, %v4839_v12, %v3434_v18 }
 0x4e1   : > { %v3499_v19 = vunpack.i.h.bf16 %v3497_v54  ;;  %v3498_v29 = vunpack.i.l.bf16 %v3497_v54  ;;  %v2548_v37 = vpack.c.bf16 %v2517_v45, %v2516_v27 }
 0x4e2   : > { %v3437_v22 = vpop.permute.xlu1 %3436 }
 0x4e3   : > { %v3439_v1 = vunpack.i.h.bf16 %v3437_v22  ;;  %v3438_v35 = vunpack.i.l.bf16 %v3437_v22  ;;  %v4962_v58 = vsel %vm1394_vm4, %v4802_v60, %v3498_v29  ;;  %v4966_v14 = vsel %vm1394_vm4, %v4797_v42, %v3499_v19  ;;  %3104 = vmatpush3.bf16.msra.mxu0 %v2548_v37 }
 0x4e4   : > { %v2563_v41 = vpack.c.bf16 %v4966_v14, %v4962_v58 }
 0x4e5   : > { %v2534_v25 = vsel %vm1394_vm4, %v4844_v47, %v3438_v35  ;;  %v2535_v12 = vsel %vm1394_vm4, %v4852_v11, %v3439_v1 }
 0x4e6   : > { %v3442_v17 = vpop.permute.xlu1 %3441  ;;  %v2557_v62 = vpack.c.bf16 %v2535_v12, %v2534_v25 }
 0x4e7   : > { %v3444_v59 = vunpack.i.h.bf16 %v3442_v17  ;;  %v3443_v15 = vunpack.i.l.bf16 %v3442_v17 }
 0x4e8   : > { %3105 = vmatprep.subr.bf16.mxu0 %v2557_v62 }
 0x4e9   : > { %v2518_v60 = vsel %vm1394_vm4, %v4858_v51, %v3443_v15  ;;  %v2519_v42 = vsel %vm1394_vm4, %v4865_v55, %v3444_v59 }
 0x4ea   : > { %v2549_v10 = vpack.c.bf16 %v2519_v42, %v2518_v60  ;;  %v3447_v4 = vpop.permute.xlu1 %3446 }
 0x4eb   : > { %v3449_v43 = vunpack.i.h.bf16 %v3447_v4  ;;  %v3448_v9 = vunpack.i.l.bf16 %v3447_v4 }
 0x4ec   : > { %3106 = vmatpush3.bf16.msra.mxu0 %v2549_v10 }
 0x4ed   : > { %v2536_v47 = vsel %vm1394_vm4, %v4715_v57, %v3448_v9  ;;  %v2537_v11 = vsel %vm1394_vm4, %v4705_v44, %v3449_v43 }
 0x4ee   : > { %v3452_v31 = vpop.permute.xlu1 %3451  ;;  %v2558_v24 = vpack.c.bf16 %v2537_v11, %v2536_v47 }
 0x4ef   : > { %v3454_v16 = vunpack.i.h.bf16 %v3452_v31  ;;  %v3453_v3 = vunpack.i.l.bf16 %v3452_v31 }
 0x4f0   : > { %3107 = vmatprep.subr.bf16.mxu0 %v2558_v24 }
 0x4f1   : > { %v2520_v51 = vsel %vm1394_vm4, %v4869_v39, %v3453_v3  ;;  %v2521_v55 = vsel %vm1394_vm4, %v4878_v34, %v3454_v16 }
 0x4f2   : > { %v2550_v21 = vpack.c.bf16 %v2521_v55, %v2520_v51  ;;  %v3457_v5 = vpop.permute.xlu1 %3456 }
 0x4f3   : > { %v3459_v13 = vunpack.i.h.bf16 %v3457_v5  ;;  %v3458_v18 = vunpack.i.l.bf16 %v3457_v5  ;;  %v2615_v5 = vld [vmem:[#allocation3 + $0x10] sm:$0xff] }
 0x4f4   : > { %3108 = vmatpush3.bf16.msra.mxu0 %v2550_v21 }
 0x4f5   : > { %v2538_v57 = vsel %vm1394_vm4, %v4735_v7, %v3458_v18  ;;  %v2539_v44 = vsel %vm1394_vm4, %v4725_v56, %v3459_v13 }
 0x4f6   : > { %v3467_v32 = vpop.permute.xlu1 %3466  ;;  %v2559_v54 = vpack.c.bf16 %v2539_v44, %v2538_v57 }
 0x4f7   : > { %v3469_v19 = vunpack.i.h.bf16 %v3467_v32  ;;  %v3468_v29 = vunpack.i.l.bf16 %v3467_v32 }
 0x4f8   : > { %3109 = vmatprep.subr.bf16.mxu0 %v2559_v54 }
 0x4f9   : > { %3110 = vmatpush3.bf16.msra.mxu0 %v2551_v49  ;;  %v2540_v39 = vsel %vm1394_vm4, %v4755_v0, %v3468_v29  ;;  %v2541_v34 = vsel %vm1394_vm4, %v4745_v6, %v3469_v19 }
 0x4fa   : > { %v3472_v27 = vpop.permute.xlu1 %3471  ;;  %v2560_v45 = vpack.c.bf16 %v2541_v34, %v2540_v39 }
 0x4fb   : > { %v3474_v37 = vunpack.i.h.bf16 %v3472_v27  ;;  %v3473_v22 = vunpack.i.l.bf16 %v3472_v27 }
 0x4fc   : > { %3111 = vmatprep.subr.bf16.mxu0 %v2560_v45 }
 0x4fd   : > { %v2524_v56 = vsel %vm1394_vm4, %v4880_v50, %v3473_v22  ;;  %v2525_v7 = vsel %vm1394_vm4, %v4882_v38, %v3474_v37 }
 0x4fe   : > { %v2552_v1 = vpack.c.bf16 %v2525_v7, %v2524_v56  ;;  %v3477_v35 = vpop.permute.xlu1 %3476 }
 0x4ff   : > { %v3479_v49 = vunpack.i.h.bf16 %v3477_v35  ;;  %v3478_v25 = vunpack.i.l.bf16 %v3477_v35 }
 0x500   : > { %3112 = vmatpush3.bf16.msra.mxu0 %v2552_v1 }
 0x501   : > { %v2542_v0 = vsel %vm1394_vm4, %v4775_v28, %v3478_v25  ;;  %v2543_v6 = vsel %vm1394_vm4, %v4765_v63, %v3479_v49 }
 0x502   : > { %v3482_v12 = vpop.permute.xlu1 %3481  ;;  %v2561_v17 = vpack.c.bf16 %v2543_v6, %v2542_v0  ;;  %v2679_v0 = vld [vmem:[%s3730_s16] sm:$0xff] (!%p2958_p9) }
 0x503   : > { %v3484_v62 = vunpack.i.h.bf16 %v3482_v12  ;;  %v3483_v59 = vunpack.i.l.bf16 %v3482_v12 }
 0x504   : > { %3113 = vmatprep.subr.bf16.mxu0 %v2561_v17 }
 0x505   : > { %v2526_v50 = vsel %vm1394_vm4, %v4884_v2, %v3483_v59  ;;  %v2527_v38 = vsel %vm1394_vm4, %v4887_v30, %v3484_v62 }
 0x506   : > { %v2553_v15 = vpack.c.bf16 %v2527_v38, %v2526_v50  ;;  %v3487_v60 = vpop.permute.xlu1 %3486  ;;  %v2680_v50 = vld [vmem:[%s3730_s16 + $0x8] sm:$0xff] (!%p2958_p9) }
 0x507   : > { %v3489_v42 = vunpack.i.h.bf16 %v3487_v60  ;;  %v3488_v10 = vunpack.i.l.bf16 %v3487_v60 }
 0x508   : > { %3114 = vmatpush3.bf16.msra.mxu0 %v2553_v15  ;;  %v2681_v15 = vld [vmem:[%s3730_s16 + $0x10] sm:$0xff] (!%p2958_p9) }
 0x509   : > { %v2544_v28 = vsel %vm1394_vm4, %v4791_v33, %v3488_v10  ;;  %v2545_v63 = vsel %vm1394_vm4, %v4783_v46, %v3489_v42  ;;  %v2682_v42 = vld [vmem:[%s3730_s16 + $0x18] sm:$0xff] (!%p2958_p9) }
 0x50a   : > { %v3492_v4 = vpop.permute.xlu1 %3491  ;;  %v2562_v43 = vpack.c.bf16 %v2545_v63, %v2544_v28 }
 0x50b   : > { %v3494_v9 = vunpack.i.h.bf16 %v3492_v4  ;;  %v3493_v47 = vunpack.i.l.bf16 %v3492_v4 }
 0x50c   : > { %3115 = vmatprep.subr.bf16.mxu0 %v2562_v43 }
 0x50d   : > { %v2528_v2 = vsel %vm1394_vm4, %v4889_v26, %v3493_v47  ;;  %v2529_v30 = vsel %vm1394_vm4, %v4893_v40, %v3494_v9  ;;  %v2613_v26 = vld [vmem:[#allocation3] sm:$0xff]  ;;  %v2627_v40 = vpop.permute.xlu0 %2626 }
 0x50e   : > { %v2554_v11 = vpack.c.bf16 %v2529_v30, %v2528_v2  ;;  %v3502_v31 = vpop.permute.xlu1 %3501  ;;  %v2629_v53 = vmul.f32 %v2627_v40, %v2613_v26  ;;  %v2631_v13 = vmul.f32 %v2627_v40, %v2615_v5  ;;  %v2632_v32 = vmul.f32 %v2627_v40, %v2616_v36 }
 0x50f   : > { %v3504_v24 = vunpack.i.h.bf16 %v3502_v31  ;;  %v3503_v16 = vunpack.i.l.bf16 %v3502_v31 }
 0x510   : > { %3116 = vmatpush3.bf16.msra.mxu0 %v2554_v11 }
 0x511   : > { %v2530_v33 = vsel %vm1394_vm4, %v4895_v8, %v3503_v16  ;;  %v2531_v46 = vsel %vm1394_vm4, %v4898_v23, %v3504_v24  ;;  %3117 = vmatprep.subr.bf16.mxu0 %v2563_v41  ;;  %v2614_v23 = vld [vmem:[#allocation3 + $0x8] sm:$0xff] }
 0x512   : > { %v2555_v3 = vpack.c.bf16 %v2531_v46, %v2530_v33  ;;  %v2630_v20 = vmul.f32 %v2627_v40, %v2614_v23 }
 0x514   : > { %3118 = vmatpush3.bf16.msra.mxu0 %v2555_v3 }
 0x517   : > { %2953 = vmatmul.mubr.msk.bf16.vlgmr.msra.gmra.mrb[60].mxu0 %vm4937_vm12, %v3623_v52 }
 0x518   : > { %2955 = vmatprep.mubr.msk.bf16.mxu0 %vm4944_vm15, %v3623_v52 }
 0x51f   : > { %2957 = vmatmul.mubr.msk.bf16.gmra.mrb[64].mxu0 %vm2956_vm2, %v3623_v52 }
 0x5ea   : > { %v3119_v8 = vpop.f32.mrb[60].mxu0 }
 0x5eb   : > { %v3120_v58 = vpop.f32.mrb[61].mxu0 }
 0x5ec   : > { %v3121_v14 = vadd.f32 %v3120_v58, %v3119_v8  ;;  %v3122_v41 = vpop.f32.mrb[62].mxu0 }
 0x5ed   : > { %v3123_v51 = vpop.f32.mrb[63].mxu0 }
 0x5ee   : > { %v2633_v55 = vadd.f32 %v3121_v14, %v2629_v53  ;;  %v3124_v21 = vadd.f32 %v3123_v51, %v3122_v41 }
 0x5f0   : > { %2637 = vst.msk [vmem:[#allocation3] sm:$0xff] %vm1442_vm5, %v2633_v55  ;;  %v2634_v48 = vadd.f32 %v3124_v21, %v2630_v20 }
 0x5f2   : > { %2638 = vst.msk [vmem:[#allocation3 + $0x8] sm:$0xff] %vm1442_vm5, %v2634_v48  ;;  %v3125_v61 = vpop.f32.mrb[64].mxu0 }
 0x5f3   : > { %v3126_v52 = vpop.f32.mrb[65].mxu0 }
 0x5f4   : > { %v3127_v18 = vadd.f32 %v3126_v52, %v3125_v61  ;;  %v3128_v57 = vpop.f32.mrb[66].mxu0  ;;  %2646 = sbr.rel (%p2958_p9) target bundleno = 1673 (0x689), region = 76 }
 0x5f5   : > { %v3129_v44 = vpop.f32.mrb[67].mxu0 }
 0x5f6   : > { %v2635_v54 = vadd.f32 %v3127_v18, %v2631_v13  ;;  %v3130_v19 = vadd.f32 %v3129_v44, %v3128_v57 }
 0x5f7   : > { %v2647_v39 = vld [vmem:[#allocation3] sm:$0xff] (!%p2958_p9) }
 0x5f8   : > { %2639 = vst.msk [vmem:[#allocation3 + $0x10] sm:$0xff] %vm1442_vm5, %v2635_v54  ;;  %v2636_v29 = vadd.f32 %v3130_v19, %v2632_v32  ;;  %v2651_v45 = vmax.f32 (!%p2958_p9), %v2647_v39, 1e-30 }
 0x5f9   : > { %v2648_v27 = vld [vmem:[#allocation3 + $0x8] sm:$0xff] (!%p2958_p9) }
 0x5fa   : > { %2640 = vst.msk [vmem:[#allocation3 + $0x18] sm:$0xff] %vm1442_vm5, %v2636_v29  ;;  %v2652_v22 = vmax.f32 (!%p2958_p9), %v2648_v27, 1e-30  ;;  %3572 = vrcp.f32 (!%p2958_p9), %v2651_v45 }
 0x5ff   : > { %v2649_v34 = vld [vmem:[#allocation3 + $0x10] sm:$0xff] }
 0x600   : > { %v2653_v37 = vmax.f32 %v2649_v34, 1e-30 }
 0x601   : > { %v2650_v56 = vld [vmem:[#allocation3 + $0x18] sm:$0xff] }
 0x602   : > { %v2654_v7 = vmax.f32 %v2650_v56, 1e-30  ;;  %3574 = vrcp.f32 %v2653_v37 }
 0x603   : > { %3576 = vrcp.f32 %v2652_v22 }
 0x604   : > { %3578 = vrcp.f32 %v2654_v7  ;;  %v3573_v1 = vpop.eup %3572 }
 0x605   : > { %2663 = vrot.lane.b32.xlu0 %v3573_v1, %s3624_s0 }
 0x60c   : > { %v3575_v35 = vpop.eup %3574 }
 0x60d   : > { %v3577_v49 = vpop.eup %3576  ;;  %2667 = vrot.lane.b32.xlu1 %v3575_v35, %s3624_s0 }
 0x60e   : > { %v3579_v25 = vpop.eup %3578  ;;  %2665 = vrot.lane.b32.xlu0 %v3577_v49, %s3624_s0 }
 0x611   : > { %2669 = vrot.lane.b32.xlu1 %v3579_v25, %s3624_s0 }
 0x677   : > { %v2664_v6 = vpop.permute.xlu0 %2663 }
 0x678   : > { %v2675_v12 = vmul.f32 %v2664_v6, %v2647_v39 }
 0x67a   : > { %v2683_v62 = vadd.f32 %v2679_v0, %v2675_v12 }
 0x67c   : > { %2687 = vst.msk [vmem:[%s3747_s14] sm:$0xff] %vm1394_vm4, %v2683_v62 }
 0x67f   : > { %v2668_v17 = vpop.permute.xlu1 %2667 }
 0x680   : > { %v2677_v59 = vmul.f32 %v2668_v17, %v2649_v34  ;;  %v2666_v38 = vpop.permute.xlu0 %2665 }
 0x681   : > { %v2676_v60 = vmul.f32 %v2666_v38, %v2648_v27 }
 0x682   : > { %v2685_v4 = vadd.f32 %v2681_v15, %v2677_v59 }
 0x683   : > { %v2670_v10 = vpop.permute.xlu1 %2669  ;;  %v2684_v63 = vadd.f32 %v2680_v50, %v2676_v60 }
 0x684   : > { %v2678_v28 = vmul.f32 %v2670_v10, %v2650_v56  ;;  %2689 = vst.msk [vmem:[%s3747_s14 + $0x10] sm:$0xff] %vm1394_vm4, %v2685_v4 }
 0x685   : > { %2688 = vst.msk [vmem:[%s3747_s14 + $0x8] sm:$0xff] %vm1394_vm4, %v2684_v63 }
 0x686   : > { %v2686_v43 = vadd.f32 %v2682_v42, %v2678_v28 }
 0x688   : > { %2690 = vst.msk [vmem:[%s3747_s14 + $0x18] sm:$0xff] %vm1394_vm4, %v2686_v43 }
 0x689 PF: > { %s22_s25 = sadd.s32 1, %s3618_s25   ;;  %s5209_s21 = sld [smem:[#allocation4_spill]] }
 0x68a   : > { %p19_p10 = scmp.ge.s32.totalorder %s22_s25, 10   ;;  %s5210_s22 = sld [smem:[#allocation5_spill]] }
 0x68b   : > { %s5211_s23 = sld [smem:[#allocation6_spill]]  ;;  %s5212_s24 = sld [smem:[#allocation7_spill]] }
 0x68c   :  { %21 = sbr.rel (!%p19_p10) target bundleno = 3 (0x3), region = 115 }

</bundles_post_ra>
